<compile_context>
chip_gen: v7x
topology: tpu7x:2x2x1
jax: 0.10.0
libtpu: 0.0.40
codegen_flags: <defaults>
</compile_context>

<pallas_src>
import jax
import jax.numpy as jnp
from jax.experimental import pallas as pl
from jax.experimental.pallas import tpu as pltpu

# ----------------------------- model hyper-params (small synthetic CLIP) -----
B = 2            # batch
C = 3            # image channels
IMG = 16         # image size (H = W)
P = 8            # patch size
GRID = IMG // P  # patches per side
NUM_PATCHES = GRID * GRID
S = NUM_PATCHES + 1          # +1 CLS token
D = 32           # hidden size
HEADS = 2
DH = D // HEADS  # head dim
FF = 4 * D       # MLP intermediate
LAYERS = 2
PROJ = 16        # projection_dim (image feature size)
LN_EPS = 1e-5
CPP = C * P * P  # im2col row width


# ----------------------------- fused forward kernel --------------------------
def _make_clip_kernel(bchunk):
    """Kernel processing `bchunk` images (folded into the matmul M dim) per grid step."""
    f32 = jnp.float32
    bf16 = jnp.bfloat16

    def layernorm(x, g, b):
        mu = jnp.mean(x, axis=-1, keepdims=True)
        var = jnp.mean(jnp.square(x - mu), axis=-1, keepdims=True)
        return (x - mu) * jax.lax.rsqrt(var + LN_EPS) * g + b

    def mm(x, w):
        # bf16 MXU operands, f32 accumulation.
        return jnp.dot(x.astype(bf16), w.astype(bf16), preferred_element_type=f32)

    def kernel(patches_ref, patch_w_ref, embed_add_ref, pre_g_ref, pre_b_ref,
               mask_ref,
               ln1_g_ref, ln1_b_ref, qkv_w_ref, qkv_b_ref, o_w_ref, o_b_ref,
               ln2_g_ref, ln2_b_ref, fc1_w_ref, fc1_b_ref, fc2_w_ref, fc2_b_ref,
               post_g_ref, post_b_ref, proj_w_ref,
               out_ref, h_ref):
        layer = pl.program_id(1)

        # ---- embeddings (first layer step only): one matmul yields the full
        #      (CLS + patches) token matrix; normalize & pos folded in wrapper ----
        @pl.when(layer == 0)
        def _():
            tok = mm(patches_ref[...], patch_w_ref[...]) + embed_add_ref[...]
            h_ref[...] = layernorm(tok, pre_g_ref[...], pre_b_ref[...])

        h = h_ref[...]                                                   # [M, D] f32

        # ---- self-attention (pre-LN, fused QKV, block-diag mask across images,
        #      single out-projection over concatenated heads) ----
        hn = layernorm(h, ln1_g_ref[...], ln1_b_ref[...])
        # attention scale already folded into q_w / q_b; cast to bf16 once.
        qkv = (mm(hn, qkv_w_ref[...]) + qkv_b_ref[...]).astype(bf16)     # [M, 3D]
        ctx_heads = []
        for hh in range(HEADS):
            q = qkv[:, hh * DH:(hh + 1) * DH]
            k = qkv[:, D + hh * DH:D + (hh + 1) * DH]
            v = qkv[:, 2 * D + hh * DH:2 * D + (hh + 1) * DH]
            s = jax.lax.dot_general(q, k, (((1,), (1,)), ((), ())),
                                    preferred_element_type=f32)          # [M, M]
            s = s + mask_ref[...]                                        # block-diag mask
            s = s - jnp.max(s, axis=-1, keepdims=True)
            p = jnp.exp(s)
            p = p / jnp.sum(p, axis=-1, keepdims=True)                   # exact divide
            ctx_heads.append(mm(p, v))                                   # [M, DH] f32
        ctx = jnp.concatenate(ctx_heads, axis=-1)                        # [M, D]
        h = h + mm(ctx, o_w_ref[...]) + o_b_ref[...]                     # out-proj + residual

        # ---- MLP block (pre-LN, quick_gelu fused after fc1) ----
        hn = layernorm(h, ln2_g_ref[...], ln2_b_ref[...])
        u = mm(hn, fc1_w_ref[...]) + fc1_b_ref[...]                      # [M, FF]
        u = u * jax.nn.sigmoid(1.702 * u)                                # quick_gelu
        h = h + mm(u, fc2_w_ref[...]) + fc2_b_ref[...]                   # residual
        h_ref[...] = h

        # ---- pool CLS rows, post-LN, visual projection (last layer only) ----
        @pl.when(layer == pl.num_programs(1) - 1)
        def _():
            cls_rows = jnp.concatenate(
                [h[img * S:img * S + 1, :] for img in range(bchunk)], axis=0)
            pooled = layernorm(cls_rows, post_g_ref[...], post_b_ref[...])  # [bchunk, D]
            out_ref[0] = mm(pooled, proj_w_ref[...])                        # [bchunk, PROJ]

    return kernel


# ----------------------------- parameter init --------------------------------
def init_params(key):
    def nrm(k, shape, scale=0.02):
        return scale * jax.random.normal(k, shape, jnp.float32)

    keys = iter(jax.random.split(key, 64 + LAYERS * 16))
    p = {
        # CLIP image processor constants
        "image_mean": jnp.array([0.48145466, 0.4578275, 0.40821073],
                                jnp.float32).reshape(1, C, 1, 1),
        "image_std": jnp.array([0.26862954, 0.26130258, 0.27577711],
                               jnp.float32).reshape(1, C, 1, 1),
        # vision embeddings
        "patch_w": nrm(next(keys), (CPP, D)),          # conv (bias=False) as matmul
        "cls": nrm(next(keys), (1, D)),
        "pos": nrm(next(keys), (S, D)),
        "pre_ln_g": jnp.ones((D,), jnp.float32),
        "pre_ln_b": jnp.zeros((D,), jnp.float32),
        "post_ln_g": jnp.ones((D,), jnp.float32),
        "post_ln_b": jnp.zeros((D,), jnp.float32),
        "proj_w": nrm(next(keys), (D, PROJ)),          # visual_projection (bias=False)
        "layers": [],
    }
    for _ in range(LAYERS):
        lp = {
            "ln1_g": jnp.ones((D,), jnp.float32),
            "ln1_b": jnp.zeros((D,), jnp.float32),
            "q_w": nrm(next(keys), (D, D)), "q_b": jnp.zeros((D,), jnp.float32),
            "k_w": nrm(next(keys), (D, D)), "k_b": jnp.zeros((D,), jnp.float32),
            "v_w": nrm(next(keys), (D, D)), "v_b": jnp.zeros((D,), jnp.float32),
            "o_w": nrm(next(keys), (D, D)), "o_b": jnp.zeros((D,), jnp.float32),
            "ln2_g": jnp.ones((D,), jnp.float32),
            "ln2_b": jnp.zeros((D,), jnp.float32),
            "fc1_w": nrm(next(keys), (D, FF)), "fc1_b": jnp.zeros((FF,), jnp.float32),
            "fc2_w": nrm(next(keys), (FF, D)), "fc2_b": jnp.zeros((D,), jnp.float32),
        }
        p["layers"].append(lp)
    return p


# ----------------------------- batch-chunk selection --------------------------
def _batch_chunk(batch):
    """Images folded into one grid step: whole batch on single-TC chips (v5e/v6e),
    batch split across TensorCores on multi-TC chips (v7x)."""
    try:
        kind = jax.devices()[0].device_kind.lower()
    except Exception:
        kind = ""
    n_tc = 2 if "v7" in kind else 1
    if n_tc > 1 and batch % n_tc == 0:
        return batch // n_tc
    return batch


# ----------------------------- forward pass ----------------------------------
def clip_get_image_features(pixel_values, params, bchunk=None):
    """pixel_values: [B, C, H, W] in [0, 1] (processor called with do_rescale=False)."""
    f32, bf16 = jnp.float32, jnp.bfloat16
    batch = pixel_values.shape[0]
    if bchunk is None:
        bchunk = _batch_chunk(batch)
    assert batch % bchunk == 0
    nsteps = batch // bchunk
    mchunk = bchunk * S

    x = pixel_values.astype(f32)

    # --- fold processor normalize into the patch-embedding weight / bias ---
    mean = params["image_mean"].reshape(C)
    std = params["image_std"].reshape(C)
    row_scale = jnp.repeat(1.0 / std, P * P)                       # [CPP]
    row_shift = jnp.repeat(mean / std, P * P)                      # [CPP]
    patch_w = (params["patch_w"] * row_scale[:, None]).astype(bf16)   # [CPP, D]
    patch_b = -(row_shift[None, :] @ params["patch_w"])               # [1, D] f32

    # --- im2col + one zero "CLS row" per image; fold batch chunks into M rows ---
    patches = (x.reshape(batch, C, GRID, P, GRID, P)
                 .transpose(0, 2, 4, 1, 3, 5)
                 .reshape(batch, NUM_PATCHES, CPP))
    patches = jnp.concatenate([jnp.zeros((batch, 1, CPP), f32), patches], axis=1)
    patches = patches.reshape(nsteps, mchunk, CPP)

    # per-token additive rows: CLS row = class_emb + pos[0]; patch rows = conv_bias + pos[i]
    embed_add = jnp.concatenate(
        [params["cls"] + params["pos"][0:1], patch_b + params["pos"][1:]], axis=0)  # [S, D]
    embed_add = jnp.tile(embed_add, (bchunk, 1))                                     # [M, D]

    # block-diagonal additive mask: no attention across the images folded into one chunk
    img_id = jnp.repeat(jnp.arange(bchunk), S)
    attn_mask = jnp.where(img_id[:, None] == img_id[None, :], 0.0, -1e30).astype(f32)

    # --- stack per-layer weights over a leading layer axis; fold attn scale into q ---
    L = params["layers"]
    stk = lambda key: jnp.stack([lp[key] for lp in L], axis=0)
    scale = DH ** -0.5
    qkv_w = jnp.concatenate([stk("q_w") * scale, stk("k_w"), stk("v_w")],
                            axis=-1).astype(bf16)                        # [L, D, 3D]
    qkv_b = jnp.concatenate([stk("q_b") * scale, stk("k_b"), stk("v_b")],
                            axis=-1).reshape(LAYERS, 1, 3 * D)
    ln1_g = stk("ln1_g").reshape(LAYERS, 1, D)
    ln1_b = stk("ln1_b").reshape(LAYERS, 1, D)
    o_w = stk("o_w").astype(bf16)                                        # [L, D, D]
    o_b = stk("o_b").reshape(LAYERS, 1, D)
    ln2_g = stk("ln2_g").reshape(LAYERS, 1, D)
    ln2_b = stk("ln2_b").reshape(LAYERS, 1, D)
    fc1_w = stk("fc1_w").astype(bf16)                                    # [L, D, FF]
    fc1_b = stk("fc1_b").reshape(LAYERS, 1, FF)
    fc2_w = stk("fc2_w").astype(bf16)                                    # [L, FF, D]
    fc2_b = stk("fc2_b").reshape(LAYERS, 1, D)

    pre_g = params["pre_ln_g"].reshape(1, D)
    pre_b = params["pre_ln_b"].reshape(1, D)
    post_g = params["post_ln_g"].reshape(1, D)
    post_b = params["post_ln_b"].reshape(1, D)
    proj_w = params["proj_w"].astype(bf16)

    # --- BlockSpecs: grid = (batch chunks [parallel], layers [arbitrary]) ---
    def full_spec(arr):
        n = arr.ndim
        return pl.BlockSpec(arr.shape, lambda i, l: (0,) * n)

    def layer_spec(arr):  # leading layer axis, one layer's slab per grid step (double-buffered)
        rest = arr.shape[1:]
        return pl.BlockSpec((pl.Squeezed(),) + rest,
                            lambda i, l: (l,) + (0,) * len(rest))

    in_specs = [
        pl.BlockSpec((pl.Squeezed(), mchunk, CPP), lambda i, l: (i, 0, 0)),  # patches
        full_spec(patch_w), full_spec(embed_add),
        full_spec(pre_g), full_spec(pre_b), full_spec(attn_mask),
        layer_spec(ln1_g), layer_spec(ln1_b),
        layer_spec(qkv_w), layer_spec(qkv_b),
        layer_spec(o_w), layer_spec(o_b),
        layer_spec(ln2_g), layer_spec(ln2_b),
        layer_spec(fc1_w), layer_spec(fc1_b),
        layer_spec(fc2_w), layer_spec(fc2_b),
        full_spec(post_g), full_spec(post_b), full_spec(proj_w),
    ]

    out = pl.pallas_call(
        _make_clip_kernel(bchunk),
        out_shape=jax.ShapeDtypeStruct((nsteps, bchunk, PROJ), jnp.float32),
        grid=(nsteps, LAYERS),
        in_specs=in_specs,
        out_specs=pl.BlockSpec((1, bchunk, PROJ), lambda i, l: (i, 0, 0)),
        scratch_shapes=[pltpu.VMEM((mchunk, D), jnp.float32)],   # activations carried over layers
        compiler_params=pltpu.CompilerParams(
            dimension_semantics=("parallel", "arbitrary")),
    )(patches, patch_w, embed_add, pre_g, pre_b, attn_mask,
      ln1_g, ln1_b, qkv_w, qkv_b, o_w, o_b, ln2_g, ln2_b,
      fc1_w, fc1_b, fc2_w, fc2_b, post_g, post_b, proj_w)

    return out.reshape(batch, PROJ)


# ----------------------------- main -------------------------------------------
if __name__ == "__main__":
    key = jax.random.PRNGKey(0)
    k_img, k_par = jax.random.split(key)

    # images in [0, 1] (do_rescale=False in the processor)
    x = jax.random.uniform(k_img, (B, C, IMG, IMG), jnp.float32)
    params = init_params(k_par)

    feats = jax.jit(clip_get_image_features)(x, params)
    feats = jax.block_until_ready(feats)

    assert feats.shape == (B, PROJ)
    assert feats.dtype == jnp.float32
    assert bool(jnp.all(jnp.isfinite(feats)))
    print("KERNEL_OK")
</pallas_src>

<mosaic_0001>
module attributes {stable_mosaic.version = 11 : i64} {
  func.func @kernel(%arg0: i32, %arg1: i32, %arg2: memref<1x10x192xf32, #tpu.memory_space<vmem>>, %arg3: memref<192x32xbf16, #tpu.memory_space<vmem>>, %arg4: memref<10x32xf32, #tpu.memory_space<vmem>>, %arg5: memref<1x32xf32, #tpu.memory_space<vmem>>, %arg6: memref<1x32xf32, #tpu.memory_space<vmem>>, %arg7: memref<10x10xf32, #tpu.memory_space<vmem>>, %arg8: memref<1x1x32xf32, #tpu.memory_space<vmem>>, %arg9: memref<1x1x32xf32, #tpu.memory_space<vmem>>, %arg10: memref<1x32x96xbf16, #tpu.memory_space<vmem>>, %arg11: memref<1x1x96xf32, #tpu.memory_space<vmem>>, %arg12: memref<1x32x32xbf16, #tpu.memory_space<vmem>>, %arg13: memref<1x1x32xf32, #tpu.memory_space<vmem>>, %arg14: memref<1x1x32xf32, #tpu.memory_space<vmem>>, %arg15: memref<1x1x32xf32, #tpu.memory_space<vmem>>, %arg16: memref<1x32x128xbf16, #tpu.memory_space<vmem>>, %arg17: memref<1x1x128xf32, #tpu.memory_space<vmem>>, %arg18: memref<1x128x32xbf16, #tpu.memory_space<vmem>>, %arg19: memref<1x1x32xf32, #tpu.memory_space<vmem>>, %arg20: memref<1x32xf32, #tpu.memory_space<vmem>>, %arg21: memref<1x32xf32, #tpu.memory_space<vmem>>, %arg22: memref<32x16xbf16, #tpu.memory_space<vmem>>, %arg23: memref<1x2x16xf32, #tpu.memory_space<vmem>>, %arg24: memref<10x32xf32, #tpu.memory_space<vmem>>) attributes {dimension_semantics = [#tpu.dimension_semantics<parallel>, #tpu.dimension_semantics<arbitrary>], iteration_bounds = array<i64: 1, 2>, scalar_prefetch = 0 : i64, scratch_operands = 1 : i64, tpu.core_type = #tpu.core_type<tc>, window_params = [{transform_indices = @transform_0, window_bounds = array<i64: 1, 10, 192>}, {pipeline_mode = #tpu.pipeline_mode<synchronous>, transform_indices = @transform_1, window_bounds = array<i64: 192, 32>}, {pipeline_mode = #tpu.pipeline_mode<synchronous>, transform_indices = @transform_2, window_bounds = array<i64: 10, 32>}, {pipeline_mode = #tpu.pipeline_mode<synchronous>, transform_indices = @transform_3, window_bounds = array<i64: 1, 32>}, {pipeline_mode = #tpu.pipeline_mode<synchronous>, transform_indices = @transform_4, window_bounds = array<i64: 1, 32>}, {pipeline_mode = #tpu.pipeline_mode<synchronous>, transform_indices = @transform_5, window_bounds = array<i64: 10, 10>}, {transform_indices = @transform_6, window_bounds = array<i64: 1, 1, 32>}, {transform_indices = @transform_7, window_bounds = array<i64: 1, 1, 32>}, {transform_indices = @transform_8, window_bounds = array<i64: 1, 32, 96>}, {transform_indices = @transform_9, window_bounds = array<i64: 1, 1, 96>}, {transform_indices = @transform_10, window_bounds = array<i64: 1, 32, 32>}, {transform_indices = @transform_11, window_bounds = array<i64: 1, 1, 32>}, {transform_indices = @transform_12, window_bounds = array<i64: 1, 1, 32>}, {transform_indices = @transform_13, window_bounds = array<i64: 1, 1, 32>}, {transform_indices = @transform_14, window_bounds = array<i64: 1, 32, 128>}, {transform_indices = @transform_15, window_bounds = array<i64: 1, 1, 128>}, {transform_indices = @transform_16, window_bounds = array<i64: 1, 128, 32>}, {transform_indices = @transform_17, window_bounds = array<i64: 1, 1, 32>}, {pipeline_mode = #tpu.pipeline_mode<synchronous>, transform_indices = @transform_18, window_bounds = array<i64: 1, 32>}, {pipeline_mode = #tpu.pipeline_mode<synchronous>, transform_indices = @transform_19, window_bounds = array<i64: 1, 32>}, {pipeline_mode = #tpu.pipeline_mode<synchronous>, transform_indices = @transform_20, window_bounds = array<i64: 32, 16>}, {transform_indices = @transform_21, window_bounds = array<i64: 1, 2, 16>}]} {
    %c0_i32 = arith.constant 0 : i32
    %0 = arith.cmpi eq, %arg1, %c0_i32 : i32
    %1 = arith.extui %0 : i1 to i32
    %c0_i32_0 = arith.constant 0 : i32
    %2 = arith.cmpi ne, %1, %c0_i32_0 : i32
    scf.if %2 {
      %c0_68 = arith.constant 0 : index
      %c0_69 = arith.constant 0 : index
      %c0_70 = arith.constant 0 : index
      %138 = vector.load %arg2[%c0_68, %c0_69, %c0_70] : memref<1x10x192xf32, #tpu.memory_space<vmem>>, vector<1x10x192xf32>
      %139 = vector.shape_cast %138 : vector<1x10x192xf32> to vector<10x192xf32>
      %c0_71 = arith.constant 0 : index
      %c0_72 = arith.constant 0 : index
      %140 = vector.load %arg3[%c0_71, %c0_72] : memref<192x32xbf16, #tpu.memory_space<vmem>>, vector<192x32xbf16>
      %141 = arith.truncf %139 : vector<10x192xf32> to vector<10x192xbf16>
      %cst_73 = arith.constant dense<0.000000e+00> : vector<10x32xf32>
      %142 = tpu.matmul %141, %140, %cst_73 {dimension_numbers = #tpu.dot_dimension_numbers<[1], [0], [0], [1], [0, 0, 1, 1], [], []>} : vector<10x192xbf16>, vector<192x32xbf16>, vector<10x32xf32> -> vector<10x32xf32>
      %c0_74 = arith.constant 0 : index
      %c0_75 = arith.constant 0 : index
      %143 = vector.load %arg4[%c0_74, %c0_75] : memref<10x32xf32, #tpu.memory_space<vmem>>, vector<10x32xf32>
      %144 = arith.addf %142, %143 : vector<10x32xf32>
      %c0_76 = arith.constant 0 : index
      %c0_77 = arith.constant 0 : index
      %145 = vector.load %arg5[%c0_76, %c0_77] : memref<1x32xf32, #tpu.memory_space<vmem>>, vector<1x32xf32>
      %c0_78 = arith.constant 0 : index
      %c0_79 = arith.constant 0 : index
      %146 = vector.load %arg6[%c0_78, %c0_79] : memref<1x32xf32, #tpu.memory_space<vmem>>, vector<1x32xf32>
      %cst_80 = arith.constant dense<0.000000e+00> : vector<10xf32>
      %147 = vector.multi_reduction <add>, %144, %cst_80 [1] : vector<10x32xf32> to vector<10xf32>
      %148 = vector.shape_cast %147 : vector<10xf32> to vector<10x1xf32>
      %cst_81 = arith.constant 3.200000e+01 : f32
      %149 = vector.broadcast %cst_81 : f32 to vector<10x1xf32>
      %150 = arith.divf %148, %149 : vector<10x1xf32>
      %151 = vector.broadcast %150 : vector<10x1xf32> to vector<10x32xf32>
      %152 = arith.subf %144, %151 : vector<10x32xf32>
      %153 = arith.mulf %152, %152 : vector<10x32xf32>
      %cst_82 = arith.constant dense<0.000000e+00> : vector<10xf32>
      %154 = vector.multi_reduction <add>, %153, %cst_82 [1] : vector<10x32xf32> to vector<10xf32>
      %155 = vector.shape_cast %154 : vector<10xf32> to vector<10x1xf32>
      %cst_83 = arith.constant 3.200000e+01 : f32
      %156 = vector.broadcast %cst_83 : f32 to vector<10x1xf32>
      %157 = arith.divf %155, %156 : vector<10x1xf32>
      %158 = vector.broadcast %150 : vector<10x1xf32> to vector<10x32xf32>
      %159 = arith.subf %144, %158 : vector<10x32xf32>
      %cst_84 = arith.constant 9.99999974E-6 : f32
      %160 = vector.broadcast %cst_84 : f32 to vector<10x1xf32>
      %161 = arith.addf %157, %160 : vector<10x1xf32>
      %162 = math.rsqrt %161 : vector<10x1xf32>
      %163 = vector.broadcast %162 : vector<10x1xf32> to vector<10x32xf32>
      %164 = arith.mulf %159, %163 : vector<10x32xf32>
      %165 = vector.broadcast %145 : vector<1x32xf32> to vector<10x32xf32>
      %166 = arith.mulf %164, %165 : vector<10x32xf32>
      %167 = vector.broadcast %146 : vector<1x32xf32> to vector<10x32xf32>
      %168 = arith.addf %166, %167 : vector<10x32xf32>
      %c0_85 = arith.constant 0 : index
      %c0_86 = arith.constant 0 : index
      %169 = vector.load %arg24[%c0_85, %c0_86] : memref<10x32xf32, #tpu.memory_space<vmem>>, vector<10x32xf32>
      tpu.vector_store %arg24[%c0_85, %c0_86], %168 {strides = array<i32>} : memref<10x32xf32, #tpu.memory_space<vmem>>, vector<10x32xf32>,
    } else {
    }
    %c0 = arith.constant 0 : index
    %c0_1 = arith.constant 0 : index
    %3 = vector.load %arg24[%c0, %c0_1] : memref<10x32xf32, #tpu.memory_space<vmem>>, vector<10x32xf32>
    %c0_2 = arith.constant 0 : index
    %c0_3 = arith.constant 0 : index
    %c0_4 = arith.constant 0 : index
    %4 = vector.load %arg8[%c0_2, %c0_3, %c0_4] : memref<1x1x32xf32, #tpu.memory_space<vmem>>, vector<1x1x32xf32>
    %5 = vector.shape_cast %4 : vector<1x1x32xf32> to vector<1x32xf32>
    %c0_5 = arith.constant 0 : index
    %c0_6 = arith.constant 0 : index
    %c0_7 = arith.constant 0 : index
    %6 = vector.load %arg9[%c0_5, %c0_6, %c0_7] : memref<1x1x32xf32, #tpu.memory_space<vmem>>, vector<1x1x32xf32>
    %7 = vector.shape_cast %6 : vector<1x1x32xf32> to vector<1x32xf32>
    %cst = arith.constant dense<0.000000e+00> : vector<10xf32>
    %8 = vector.multi_reduction <add>, %3, %cst [1] : vector<10x32xf32> to vector<10xf32>
    %9 = vector.shape_cast %8 : vector<10xf32> to vector<10x1xf32>
    %cst_8 = arith.constant 3.200000e+01 : f32
    %10 = vector.broadcast %cst_8 : f32 to vector<10x1xf32>
    %11 = arith.divf %9, %10 : vector<10x1xf32>
    %12 = vector.broadcast %11 : vector<10x1xf32> to vector<10x32xf32>
    %13 = arith.subf %3, %12 : vector<10x32xf32>
    %14 = arith.mulf %13, %13 : vector<10x32xf32>
    %cst_9 = arith.constant dense<0.000000e+00> : vector<10xf32>
    %15 = vector.multi_reduction <add>, %14, %cst_9 [1] : vector<10x32xf32> to vector<10xf32>
    %16 = vector.shape_cast %15 : vector<10xf32> to vector<10x1xf32>
    %cst_10 = arith.constant 3.200000e+01 : f32
    %17 = vector.broadcast %cst_10 : f32 to vector<10x1xf32>
    %18 = arith.divf %16, %17 : vector<10x1xf32>
    %19 = vector.broadcast %11 : vector<10x1xf32> to vector<10x32xf32>
    %20 = arith.subf %3, %19 : vector<10x32xf32>
    %cst_11 = arith.constant 9.99999974E-6 : f32
    %21 = vector.broadcast %cst_11 : f32 to vector<10x1xf32>
    %22 = arith.addf %18, %21 : vector<10x1xf32>
    %23 = math.rsqrt %22 : vector<10x1xf32>
    %24 = vector.broadcast %23 : vector<10x1xf32> to vector<10x32xf32>
    %25 = arith.mulf %20, %24 : vector<10x32xf32>
    %26 = vector.broadcast %5 : vector<1x32xf32> to vector<10x32xf32>
    %27 = arith.mulf %25, %26 : vector<10x32xf32>
    %28 = vector.broadcast %7 : vector<1x32xf32> to vector<10x32xf32>
    %29 = arith.addf %27, %28 : vector<10x32xf32>
    %c0_12 = arith.constant 0 : index
    %c0_13 = arith.constant 0 : index
    %c0_14 = arith.constant 0 : index
    %30 = vector.load %arg10[%c0_12, %c0_13, %c0_14] : memref<1x32x96xbf16, #tpu.memory_space<vmem>>, vector<1x32x96xbf16>
    %31 = vector.shape_cast %30 : vector<1x32x96xbf16> to vector<32x96xbf16>
    %32 = arith.truncf %29 : vector<10x32xf32> to vector<10x32xbf16>
    %cst_15 = arith.constant dense<0.000000e+00> : vector<10x96xf32>
    %33 = tpu.matmul %32, %31, %cst_15 {dimension_numbers = #tpu.dot_dimension_numbers<[1], [0], [0], [1], [0, 0, 1, 1], [], []>} : vector<10x32xbf16>, vector<32x96xbf16>, vector<10x96xf32> -> vector<10x96xf32>
    %c0_16 = arith.constant 0 : index
    %c0_17 = arith.constant 0 : index
    %c0_18 = arith.constant 0 : index
    %34 = vector.load %arg11[%c0_16, %c0_17, %c0_18] : memref<1x1x96xf32, #tpu.memory_space<vmem>>, vector<1x1x96xf32>
    %35 = vector.shape_cast %34 : vector<1x1x96xf32> to vector<1x96xf32>
    %36 = vector.broadcast %35 : vector<1x96xf32> to vector<10x96xf32>
    %37 = arith.addf %33, %36 : vector<10x96xf32>
    %38 = arith.truncf %37 : vector<10x96xf32> to vector<10x96xbf16>
    %39 = vector.extract_strided_slice %38 {offsets = [0, 0], sizes = [10, 16], strides = [1, 1]} : vector<10x96xbf16> to vector<10x16xbf16>
    %40 = vector.extract_strided_slice %38 {offsets = [0, 32], sizes = [10, 16], strides = [1, 1]} : vector<10x96xbf16> to vector<10x16xbf16>
    %41 = vector.extract_strided_slice %38 {offsets = [0, 64], sizes = [10, 16], strides = [1, 1]} : vector<10x96xbf16> to vector<10x16xbf16>
    %cst_19 = arith.constant dense<0.000000e+00> : vector<10x10xf32>
    %42 = tpu.matmul %39, %40, %cst_19 {dimension_numbers = #tpu.dot_dimension_numbers<[1], [1], [0], [0], [0, 0, 1, 0], [], []>} : vector<10x16xbf16>, vector<10x16xbf16>, vector<10x10xf32> -> vector<10x10xf32>
    %c0_20 = arith.constant 0 : index
    %c0_21 = arith.constant 0 : index
    %43 = vector.load %arg7[%c0_20, %c0_21] : memref<10x10xf32, #tpu.memory_space<vmem>>, vector<10x10xf32>
    %44 = arith.addf %42, %43 : vector<10x10xf32>
    %cst_22 = arith.constant dense<0xFF800000> : vector<10xf32>
    %45 = vector.multi_reduction <maximumf>, %44, %cst_22 [1] : vector<10x10xf32> to vector<10xf32>
    %46 = vector.shape_cast %45 : vector<10xf32> to vector<10x1xf32>
    %47 = vector.broadcast %46 : vector<10x1xf32> to vector<10x10xf32>
    %48 = arith.subf %44, %47 : vector<10x10xf32>
    %49 = math.exp %48 : vector<10x10xf32>
    %cst_23 = arith.constant dense<0.000000e+00> : vector<10xf32>
    %50 = vector.multi_reduction <add>, %49, %cst_23 [1] : vector<10x10xf32> to vector<10xf32>
    %51 = vector.shape_cast %50 : vector<10xf32> to vector<10x1xf32>
    %52 = vector.broadcast %51 : vector<10x1xf32> to vector<10x10xf32>
    %53 = arith.divf %49, %52 : vector<10x10xf32>
    %54 = arith.truncf %53 : vector<10x10xf32> to vector<10x10xbf16>
    %cst_24 = arith.constant dense<0.000000e+00> : vector<10x16xf32>
    %55 = tpu.matmul %54, %41, %cst_24 {dimension_numbers = #tpu.dot_dimension_numbers<[1], [0], [0], [1], [0, 0, 1, 1], [], []>} : vector<10x10xbf16>, vector<10x16xbf16>, vector<10x16xf32> -> vector<10x16xf32>
    %56 = vector.extract_strided_slice %38 {offsets = [0, 16], sizes = [10, 16], strides = [1, 1]} : vector<10x96xbf16> to vector<10x16xbf16>
    %57 = vector.extract_strided_slice %38 {offsets = [0, 48], sizes = [10, 16], strides = [1, 1]} : vector<10x96xbf16> to vector<10x16xbf16>
    %58 = vector.extract_strided_slice %38 {offsets = [0, 80], sizes = [10, 16], strides = [1, 1]} : vector<10x96xbf16> to vector<10x16xbf16>
    %cst_25 = arith.constant dense<0.000000e+00> : vector<10x10xf32>
    %59 = tpu.matmul %56, %57, %cst_25 {dimension_numbers = #tpu.dot_dimension_numbers<[1], [1], [0], [0], [0, 0, 1, 0], [], []>} : vector<10x16xbf16>, vector<10x16xbf16>, vector<10x10xf32> -> vector<10x10xf32>
    %c0_26 = arith.constant 0 : index
    %c0_27 = arith.constant 0 : index
    %60 = vector.load %arg7[%c0_26, %c0_27] : memref<10x10xf32, #tpu.memory_space<vmem>>, vector<10x10xf32>
    %61 = arith.addf %59, %60 : vector<10x10xf32>
    %cst_28 = arith.constant dense<0xFF800000> : vector<10xf32>
    %62 = vector.multi_reduction <maximumf>, %61, %cst_28 [1] : vector<10x10xf32> to vector<10xf32>
    %63 = vector.shape_cast %62 : vector<10xf32> to vector<10x1xf32>
    %64 = vector.broadcast %63 : vector<10x1xf32> to vector<10x10xf32>
    %65 = arith.subf %61, %64 : vector<10x10xf32>
    %66 = math.exp %65 : vector<10x10xf32>
    %cst_29 = arith.constant dense<0.000000e+00> : vector<10xf32>
    %67 = vector.multi_reduction <add>, %66, %cst_29 [1] : vector<10x10xf32> to vector<10xf32>
    %68 = vector.shape_cast %67 : vector<10xf32> to vector<10x1xf32>
    %69 = vector.broadcast %68 : vector<10x1xf32> to vector<10x10xf32>
    %70 = arith.divf %66, %69 : vector<10x10xf32>
    %71 = arith.truncf %70 : vector<10x10xf32> to vector<10x10xbf16>
    %cst_30 = arith.constant dense<0.000000e+00> : vector<10x16xf32>
    %72 = tpu.matmul %71, %58, %cst_30 {dimension_numbers = #tpu.dot_dimension_numbers<[1], [0], [0], [1], [0, 0, 1, 1], [], []>} : vector<10x10xbf16>, vector<10x16xbf16>, vector<10x16xf32> -> vector<10x16xf32>
    %73 = tpu.concatenate %55, %72 in 1 : vector<10x16xf32>, vector<10x16xf32> -> vector<10x32xf32>
    %c0_31 = arith.constant 0 : index
    %c0_32 = arith.constant 0 : index
    %c0_33 = arith.constant 0 : index
    %74 = vector.load %arg12[%c0_31, %c0_32, %c0_33] : memref<1x32x32xbf16, #tpu.memory_space<vmem>>, vector<1x32x32xbf16>
    %75 = vector.shape_cast %74 : vector<1x32x32xbf16> to vector<32x32xbf16>
    %76 = arith.truncf %73 : vector<10x32xf32> to vector<10x32xbf16>
    %cst_34 = arith.constant dense<0.000000e+00> : vector<10x32xf32>
    %77 = tpu.matmul %76, %75, %cst_34 {dimension_numbers = #tpu.dot_dimension_numbers<[1], [0], [0], [1], [0, 0, 1, 1], [], []>} : vector<10x32xbf16>, vector<32x32xbf16>, vector<10x32xf32> -> vector<10x32xf32>
    %78 = arith.addf %3, %77 : vector<10x32xf32>
    %c0_35 = arith.constant 0 : index
    %c0_36 = arith.constant 0 : index
    %c0_37 = arith.constant 0 : index
    %79 = vector.load %arg13[%c0_35, %c0_36, %c0_37] : memref<1x1x32xf32, #tpu.memory_space<vmem>>, vector<1x1x32xf32>
    %80 = vector.shape_cast %79 : vector<1x1x32xf32> to vector<1x32xf32>
    %81 = vector.broadcast %80 : vector<1x32xf32> to vector<10x32xf32>
    %82 = arith.addf %78, %81 : vector<10x32xf32>
    %c0_38 = arith.constant 0 : index
    %c0_39 = arith.constant 0 : index
    %c0_40 = arith.constant 0 : index
    %83 = vector.load %arg14[%c0_38, %c0_39, %c0_40] : memref<1x1x32xf32, #tpu.memory_space<vmem>>, vector<1x1x32xf32>
    %84 = vector.shape_cast %83 : vector<1x1x32xf32> to vector<1x32xf32>
    %c0_41 = arith.constant 0 : index
    %c0_42 = arith.constant 0 : index
    %c0_43 = arith.constant 0 : index
    %85 = vector.load %arg15[%c0_41, %c0_42, %c0_43] : memref<1x1x32xf32, #tpu.memory_space<vmem>>, vector<1x1x32xf32>
    %86 = vector.shape_cast %85 : vector<1x1x32xf32> to vector<1x32xf32>
    %cst_44 = arith.constant dense<0.000000e+00> : vector<10xf32>
    %87 = vector.multi_reduction <add>, %82, %cst_44 [1] : vector<10x32xf32> to vector<10xf32>
    %88 = vector.shape_cast %87 : vector<10xf32> to vector<10x1xf32>
    %cst_45 = arith.constant 3.200000e+01 : f32
    %89 = vector.broadcast %cst_45 : f32 to vector<10x1xf32>
    %90 = arith.divf %88, %89 : vector<10x1xf32>
    %91 = vector.broadcast %90 : vector<10x1xf32> to vector<10x32xf32>
    %92 = arith.subf %82, %91 : vector<10x32xf32>
    %93 = arith.mulf %92, %92 : vector<10x32xf32>
    %cst_46 = arith.constant dense<0.000000e+00> : vector<10xf32>
    %94 = vector.multi_reduction <add>, %93, %cst_46 [1] : vector<10x32xf32> to vector<10xf32>
    %95 = vector.shape_cast %94 : vector<10xf32> to vector<10x1xf32>
    %cst_47 = arith.constant 3.200000e+01 : f32
    %96 = vector.broadcast %cst_47 : f32 to vector<10x1xf32>
    %97 = arith.divf %95, %96 : vector<10x1xf32>
    %98 = vector.broadcast %90 : vector<10x1xf32> to vector<10x32xf32>
    %99 = arith.subf %82, %98 : vector<10x32xf32>
    %cst_48 = arith.constant 9.99999974E-6 : f32
    %100 = vector.broadcast %cst_48 : f32 to vector<10x1xf32>
    %101 = arith.addf %97, %100 : vector<10x1xf32>
    %102 = math.rsqrt %101 : vector<10x1xf32>
    %103 = vector.broadcast %102 : vector<10x1xf32> to vector<10x32xf32>
    %104 = arith.mulf %99, %103 : vector<10x32xf32>
    %105 = vector.broadcast %84 : vector<1x32xf32> to vector<10x32xf32>
    %106 = arith.mulf %104, %105 : vector<10x32xf32>
    %107 = vector.broadcast %86 : vector<1x32xf32> to vector<10x32xf32>
    %108 = arith.addf %106, %107 : vector<10x32xf32>
    %c0_49 = arith.constant 0 : index
    %c0_50 = arith.constant 0 : index
    %c0_51 = arith.constant 0 : index
    %109 = vector.load %arg16[%c0_49, %c0_50, %c0_51] : memref<1x32x128xbf16, #tpu.memory_space<vmem>>, vector<1x32x128xbf16>
    %110 = vector.shape_cast %109 : vector<1x32x128xbf16> to vector<32x128xbf16>
    %111 = arith.truncf %108 : vector<10x32xf32> to vector<10x32xbf16>
    %cst_52 = arith.constant dense<0.000000e+00> : vector<10x128xf32>
    %112 = tpu.matmul %111, %110, %cst_52 {dimension_numbers = #tpu.dot_dimension_numbers<[1], [0], [0], [1], [0, 0, 1, 1], [], []>} : vector<10x32xbf16>, vector<32x128xbf16>, vector<10x128xf32> -> vector<10x128xf32>
    %c0_53 = arith.constant 0 : index
    %c0_54 = arith.constant 0 : index
    %c0_55 = arith.constant 0 : index
    %113 = vector.load %arg17[%c0_53, %c0_54, %c0_55] : memref<1x1x128xf32, #tpu.memory_space<vmem>>, vector<1x1x128xf32>
    %114 = vector.shape_cast %113 : vector<1x1x128xf32> to vector<1x128xf32>
    %115 = vector.broadcast %114 : vector<1x128xf32> to vector<10x128xf32>
    %116 = arith.addf %112, %115 : vector<10x128xf32>
    %cst_56 = arith.constant 1.702000e+00 : f32
    %117 = vector.broadcast %cst_56 : f32 to vector<10x128xf32>
    %118 = arith.mulf %117, %116 : vector<10x128xf32>
    %119 = arith.negf %118 : vector<10x128xf32>
    %120 = math.exp %119 : vector<10x128xf32>
    %cst_57 = arith.constant 1.000000e+00 : f32
    %121 = vector.broadcast %cst_57 : f32 to vector<10x128xf32>
    %122 = arith.addf %121, %120 : vector<10x128xf32>
    %123 = arith.divf %121, %122 : vector<10x128xf32>
    %124 = arith.mulf %116, %123 : vector<10x128xf32>
    %c0_58 = arith.constant 0 : index
    %c0_59 = arith.constant 0 : index
    %c0_60 = arith.constant 0 : index
    %125 = vector.load %arg18[%c0_58, %c0_59, %c0_60] : memref<1x128x32xbf16, #tpu.memory_space<vmem>>, vector<1x128x32xbf16>
    %126 = vector.shape_cast %125 : vector<1x128x32xbf16> to vector<128x32xbf16>
    %127 = arith.truncf %124 : vector<10x128xf32> to vector<10x128xbf16>
    %cst_61 = arith.constant dense<0.000000e+00> : vector<10x32xf32>
    %128 = tpu.matmul %127, %126, %cst_61 {dimension_numbers = #tpu.dot_dimension_numbers<[1], [0], [0], [1], [0, 0, 1, 1], [], []>} : vector<10x128xbf16>, vector<128x32xbf16>, vector<10x32xf32> -> vector<10x32xf32>
    %129 = arith.addf %82, %128 : vector<10x32xf32>
    %c0_62 = arith.constant 0 : index
    %c0_63 = arith.constant 0 : index
    %c0_64 = arith.constant 0 : index
    %130 = vector.load %arg19[%c0_62, %c0_63, %c0_64] : memref<1x1x32xf32, #tpu.memory_space<vmem>>, vector<1x1x32xf32>
    %131 = vector.shape_cast %130 : vector<1x1x32xf32> to vector<1x32xf32>
    %132 = vector.broadcast %131 : vector<1x32xf32> to vector<10x32xf32>
    %133 = arith.addf %129, %132 : vector<10x32xf32>
    %c0_65 = arith.constant 0 : index
    %c0_66 = arith.constant 0 : index
    %134 = vector.load %arg24[%c0_65, %c0_66] : memref<10x32xf32, #tpu.memory_space<vmem>>, vector<10x32xf32>
    tpu.vector_store %arg24[%c0_65, %c0_66], %133 {strides = array<i32>} : memref<10x32xf32, #tpu.memory_space<vmem>>, vector<10x32xf32>,
    %c1_i32 = arith.constant 1 : i32
    %135 = arith.cmpi eq, %arg1, %c1_i32 : i32
    %136 = arith.extui %135 : i1 to i32
    %c0_i32_67 = arith.constant 0 : i32
    %137 = arith.cmpi ne, %136, %c0_i32_67 : i32
    scf.if %137 {
      %138 = vector.extract_strided_slice %133 {offsets = [0, 0], sizes = [1, 32], strides = [1, 1]} : vector<10x32xf32> to vector<1x32xf32>
      %139 = vector.extract_strided_slice %133 {offsets = [5, 0], sizes = [1, 32], strides = [1, 1]} : vector<10x32xf32> to vector<1x32xf32>
      %140 = tpu.concatenate %138, %139 in 0 : vector<1x32xf32>, vector<1x32xf32> -> vector<2x32xf32>
      %c0_68 = arith.constant 0 : index
      %c0_69 = arith.constant 0 : index
      %141 = vector.load %arg20[%c0_68, %c0_69] : memref<1x32xf32, #tpu.memory_space<vmem>>, vector<1x32xf32>
      %c0_70 = arith.constant 0 : index
      %c0_71 = arith.constant 0 : index
      %142 = vector.load %arg21[%c0_70, %c0_71] : memref<1x32xf32, #tpu.memory_space<vmem>>, vector<1x32xf32>
      %cst_72 = arith.constant dense<0.000000e+00> : vector<2xf32>
      %143 = vector.multi_reduction <add>, %140, %cst_72 [1] : vector<2x32xf32> to vector<2xf32>
      %144 = vector.shape_cast %143 : vector<2xf32> to vector<2x1xf32>
      %cst_73 = arith.constant 3.200000e+01 : f32
      %145 = vector.broadcast %cst_73 : f32 to vector<2x1xf32>
      %146 = arith.divf %144, %145 : vector<2x1xf32>
      %147 = vector.broadcast %146 : vector<2x1xf32> to vector<2x32xf32>
      %148 = arith.subf %140, %147 : vector<2x32xf32>
      %149 = arith.mulf %148, %148 : vector<2x32xf32>
      %cst_74 = arith.constant dense<0.000000e+00> : vector<2xf32>
      %150 = vector.multi_reduction <add>, %149, %cst_74 [1] : vector<2x32xf32> to vector<2xf32>
      %151 = vector.shape_cast %150 : vector<2xf32> to vector<2x1xf32>
      %cst_75 = arith.constant 3.200000e+01 : f32
      %152 = vector.broadcast %cst_75 : f32 to vector<2x1xf32>
      %153 = arith.divf %151, %152 : vector<2x1xf32>
      %154 = vector.broadcast %146 : vector<2x1xf32> to vector<2x32xf32>
      %155 = arith.subf %140, %154 : vector<2x32xf32>
      %cst_76 = arith.constant 9.99999974E-6 : f32
      %156 = vector.broadcast %cst_76 : f32 to vector<2x1xf32>
      %157 = arith.addf %153, %156 : vector<2x1xf32>
      %158 = math.rsqrt %157 : vector<2x1xf32>
      %159 = vector.broadcast %158 : vector<2x1xf32> to vector<2x32xf32>
      %160 = arith.mulf %155, %159 : vector<2x32xf32>
      %161 = vector.broadcast %141 : vector<1x32xf32> to vector<2x32xf32>
      %162 = arith.mulf %160, %161 : vector<2x32xf32>
      %163 = vector.broadcast %142 : vector<1x32xf32> to vector<2x32xf32>
      %164 = arith.addf %162, %163 : vector<2x32xf32>
      %c0_77 = arith.constant 0 : index
      %c0_78 = arith.constant 0 : index
      %165 = vector.load %arg22[%c0_77, %c0_78] : memref<32x16xbf16, #tpu.memory_space<vmem>>, vector<32x16xbf16>
      %166 = arith.truncf %164 : vector<2x32xf32> to vector<2x32xbf16>
      %cst_79 = arith.constant dense<0.000000e+00> : vector<2x16xf32>
      %167 = tpu.matmul %166, %165, %cst_79 {dimension_numbers = #tpu.dot_dimension_numbers<[1], [0], [0], [1], [0, 0, 1, 1], [], []>} : vector<2x32xbf16>, vector<32x16xbf16>, vector<2x16xf32> -> vector<2x16xf32>
      %c0_80 = arith.constant 0 : index
      %c0_81 = arith.constant 0 : index
      %c0_82 = arith.constant 0 : index
      %168 = vector.load %arg23[%c0_80, %c0_81, %c0_82] : memref<1x2x16xf32, #tpu.memory_space<vmem>>, vector<1x2x16xf32>
      %169 = vector.shape_cast %168 : vector<1x2x16xf32> to vector<2x16xf32>
      %170 = vector.shape_cast %167 : vector<2x16xf32> to vector<1x2x16xf32>
      tpu.vector_store %arg23[%c0_80, %c0_81, %c0_82], %170 {strides = array<i32>} : memref<1x2x16xf32, #tpu.memory_space<vmem>>, vector<1x2x16xf32>,
    } else {
    }
    return
  }
  func.func @transform_0(%arg0: i32, %arg1: i32) -> (i32, i32, i32) {
    %c0_i32 = arith.constant 0 : i32
    %c0_i32_0 = arith.constant 0 : i32
    %c0_i32_1 = arith.constant 0 : i32
    return %arg0, %c0_i32, %c0_i32_0 : i32, i32, i32
  }
  func.func @transform_1(%arg0: i32, %arg1: i32) -> (i32, i32) {
    %c0_i32 = arith.constant 0 : i32
    %c0_i32_0 = arith.constant 0 : i32
    %c0_i32_1 = arith.constant 0 : i32
    return %c0_i32, %c0_i32_0 : i32, i32
  }
  func.func @transform_2(%arg0: i32, %arg1: i32) -> (i32, i32) {
    %c0_i32 = arith.constant 0 : i32
    %c0_i32_0 = arith.constant 0 : i32
    %c0_i32_1 = arith.constant 0 : i32
    return %c0_i32, %c0_i32_0 : i32, i32
  }
  func.func @transform_3(%arg0: i32, %arg1: i32) -> (i32, i32) {
    %c0_i32 = arith.constant 0 : i32
    %c0_i32_0 = arith.constant 0 : i32
    %c0_i32_1 = arith.constant 0 : i32
    return %c0_i32, %c0_i32_0 : i32, i32
  }
  func.func @transform_4(%arg0: i32, %arg1: i32) -> (i32, i32) {
    %c0_i32 = arith.constant 0 : i32
    %c0_i32_0 = arith.constant 0 : i32
    %c0_i32_1 = arith.constant 0 : i32
    return %c0_i32, %c0_i32_0 : i32, i32
  }
  func.func @transform_5(%arg0: i32, %arg1: i32) -> (i32, i32) {
    %c0_i32 = arith.constant 0 : i32
    %c0_i32_0 = arith.constant 0 : i32
    %c0_i32_1 = arith.constant 0 : i32
    return %c0_i32, %c0_i32_0 : i32, i32
  }
  func.func @transform_6(%arg0: i32, %arg1: i32) -> (i32, i32, i32) {
    %c0_i32 = arith.constant 0 : i32
    %c0_i32_0 = arith.constant 0 : i32
    %c0_i32_1 = arith.constant 0 : i32
    return %arg1, %c0_i32, %c0_i32_0 : i32, i32, i32
  }
  func.func @transform_7(%arg0: i32, %arg1: i32) -> (i32, i32, i32) {
    %c0_i32 = arith.constant 0 : i32
    %c0_i32_0 = arith.constant 0 : i32
    %c0_i32_1 = arith.constant 0 : i32
    return %arg1, %c0_i32, %c0_i32_0 : i32, i32, i32
  }
  func.func @transform_8(%arg0: i32, %arg1: i32) -> (i32, i32, i32) {
    %c0_i32 = arith.constant 0 : i32
    %c0_i32_0 = arith.constant 0 : i32
    %c0_i32_1 = arith.constant 0 : i32
    return %arg1, %c0_i32, %c0_i32_0 : i32, i32, i32
  }
  func.func @transform_9(%arg0: i32, %arg1: i32) -> (i32, i32, i32) {
    %c0_i32 = arith.constant 0 : i32
    %c0_i32_0 = arith.constant 0 : i32
    %c0_i32_1 = arith.constant 0 : i32
    return %arg1, %c0_i32, %c0_i32_0 : i32, i32, i32
  }
  func.func @transform_10(%arg0: i32, %arg1: i32) -> (i32, i32, i32) {
    %c0_i32 = arith.constant 0 : i32
    %c0_i32_0 = arith.constant 0 : i32
    %c0_i32_1 = arith.constant 0 : i32
    return %arg1, %c0_i32, %c0_i32_0 : i32, i32, i32
  }
  func.func @transform_11(%arg0: i32, %arg1: i32) -> (i32, i32, i32) {
    %c0_i32 = arith.constant 0 : i32
    %c0_i32_0 = arith.constant 0 : i32
    %c0_i32_1 = arith.constant 0 : i32
    return %arg1, %c0_i32, %c0_i32_0 : i32, i32, i32
  }
  func.func @transform_12(%arg0: i32, %arg1: i32) -> (i32, i32, i32) {
    %c0_i32 = arith.constant 0 : i32
    %c0_i32_0 = arith.constant 0 : i32
    %c0_i32_1 = arith.constant 0 : i32
    return %arg1, %c0_i32, %c0_i32_0 : i32, i32, i32
  }
  func.func @transform_13(%arg0: i32, %arg1: i32) -> (i32, i32, i32) {
    %c0_i32 = arith.constant 0 : i32
    %c0_i32_0 = arith.constant 0 : i32
    %c0_i32_1 = arith.constant 0 : i32
    return %arg1, %c0_i32, %c0_i32_0 : i32, i32, i32
  }
  func.func @transform_14(%arg0: i32, %arg1: i32) -> (i32, i32, i32) {
    %c0_i32 = arith.constant 0 : i32
    %c0_i32_0 = arith.constant 0 : i32
    %c0_i32_1 = arith.constant 0 : i32
    return %arg1, %c0_i32, %c0_i32_0 : i32, i32, i32
  }
  func.func @transform_15(%arg0: i32, %arg1: i32) -> (i32, i32, i32) {
    %c0_i32 = arith.constant 0 : i32
    %c0_i32_0 = arith.constant 0 : i32
    %c0_i32_1 = arith.constant 0 : i32
    return %arg1, %c0_i32, %c0_i32_0 : i32, i32, i32
  }
  func.func @transform_16(%arg0: i32, %arg1: i32) -> (i32, i32, i32) {
    %c0_i32 = arith.constant 0 : i32
    %c0_i32_0 = arith.constant 0 : i32
    %c0_i32_1 = arith.constant 0 : i32
    return %arg1, %c0_i32, %c0_i32_0 : i32, i32, i32
  }
  func.func @transform_17(%arg0: i32, %arg1: i32) -> (i32, i32, i32) {
    %c0_i32 = arith.constant 0 : i32
    %c0_i32_0 = arith.constant 0 : i32
    %c0_i32_1 = arith.constant 0 : i32
    return %arg1, %c0_i32, %c0_i32_0 : i32, i32, i32
  }
  func.func @transform_18(%arg0: i32, %arg1: i32) -> (i32, i32) {
    %c0_i32 = arith.constant 0 : i32
    %c0_i32_0 = arith.constant 0 : i32
    %c0_i32_1 = arith.constant 0 : i32
    return %c0_i32, %c0_i32_0 : i32, i32
  }
  func.func @transform_19(%arg0: i32, %arg1: i32) -> (i32, i32) {
    %c0_i32 = arith.constant 0 : i32
    %c0_i32_0 = arith.constant 0 : i32
    %c0_i32_1 = arith.constant 0 : i32
    return %c0_i32, %c0_i32_0 : i32, i32
  }
  func.func @transform_20(%arg0: i32, %arg1: i32) -> (i32, i32) {
    %c0_i32 = arith.constant 0 : i32
    %c0_i32_0 = arith.constant 0 : i32
    %c0_i32_1 = arith.constant 0 : i32
    return %c0_i32, %c0_i32_0 : i32, i32
  }
  func.func @transform_21(%arg0: i32, %arg1: i32) -> (i32, i32, i32) {
    %c0_i32 = arith.constant 0 : i32
    %c0_i32_0 = arith.constant 0 : i32
    %c0_i32_1 = arith.constant 0 : i32
    return %arg0, %c0_i32, %c0_i32_0 : i32, i32, i32
  }
}

</mosaic_0001>

<bundles_post_ra>
// kernel: mul.11
= control target key start
LH: loop header
LB: loop body
LE: loop exit
PB: predicated region body
PF: predicated region fallthrough
CT: control target
= control target key end

     0   :  { %vm8_vm0 = vcmask 523264   ;;  %s23_s8 = smov 64   ;;  %vm14_vm1 = vcmask 1048064   ;;  %s40_s0 = inlined_call_operand.vmem [shape: f32[3,64], index: 0, kind: input, shape index: {}]   ;;  %s41_s1 = inlined_call_operand.vmem [shape: f32[192], index: 1, kind: output, shape index: {}]  }
   0x1   :  { %v4_v0 = vld [vmem:[%s40_s0] sm:$0xf]  ;;  %s6_s0 = smov 3 }
   0x2   :  { %5 = vst [vmem:[#allocation1] sm:$0xf] %v4_v0 }
   0x9   :  { %v11_v1 = vld [vmem:[#allocation1 + $0x1] sm:$0x1]   ;;  %v7_v2 = vld [vmem:[#allocation1] ss:$2 sm:%s6_s0]  }
   0xa   :  { %12 = vrot.lane.b32.xlu0 %v11_v1, %s23_s8  ;;  %9 = vst.msk [vmem:[#allocation0] sm:$0x3] %vm8_vm0, %v7_v2  }
  0x7c   :  { %v13_v3 = vpop.permute.xlu0 %12  }
  0x7d   :  { %15 = vst.msk [vmem:[#allocation0] sm:$0x1] %vm14_vm1, %v13_v3  }
  0x84   :  { %v19_v4 = vld [vmem:[#allocation0] sm:$0x3] }
  0x85   :  { %21 = vst [vmem:[%s41_s1] sm:$0x3] %v19_v4 }

// kernel: neg.0
= control target key start
LH: loop header
LB: loop body
LE: loop exit
PB: predicated region body
PF: predicated region fallthrough
CT: control target
= control target key end

     0   :  { %s24_s0 = inlined_call_operand.vmem [shape: f32[32], index: 0, kind: input, shape index: {}]   ;;  %s25_s1 = inlined_call_operand.vmem [shape: f32[32], index: 1, kind: output, shape index: {}]  }
   0x1   :  { %v2_v0 = vld [vmem:[%s24_s0] sm:$0x1] }
   0x2   :  { %v5_v1 = vxor.u32 2147483648, %v2_v0 }
   0x4   :  { %7 = vst [vmem:[%s25_s1] sm:$0x1] %v5_v1 }

// kernel: tile.9
= control target key start
LH: loop header
LB: loop body
LE: loop exit
PB: predicated region body
PF: predicated region fallthrough
CT: control target
= control target key end

     0   :  { %vm3_vm0 = vcmask 261120   ;;  %s34_s0 = inlined_call_operand.vmem [shape: f32[2,5,32], index: 0, kind: input, shape index: {}]   ;;  %s35_s1 = inlined_call_operand.vmem [shape: f32[10,32], index: 1, kind: output, shape index: {}]  }
   0x1   :  { %v2_v0 = vld [vmem:[%s34_s0] sm:$0x1f]   ;;  %v10_v1 = vld [vmem:[%s34_s0 + $0x8] sm:$0x1f]  }
   0x2   :  { %4 = vst.msk [vmem:[%s35_s1] sm:$0x1f] %vm3_vm0, %v2_v0   ;;  %11 = vst.msk [vmem:[%s35_s1 + $0x5] sm:$0x1f] %vm3_vm0, %v10_v1  }

// kernel: eq.8
= control target key start
LH: loop header
LB: loop body
LE: loop exit
PB: predicated region body
PF: predicated region fallthrough
CT: control target
= control target key end

     0   :  { %vm7_vm0 = vcmask 39936   ;;  %vm13_vm1 = vcmask 80936   ;;  %s39_s0 = inlined_call_operand.vmem [shape: s32[2,5], index: 0, kind: input, shape index: {}]   ;;  %s40_s1 = inlined_call_operand.vmem [shape: s32[10], index: 1, kind: output, shape index: {}]  }
   0x1   :  { %v4_v0 = vld [vmem:[%s39_s0] sm:$0x3]  ;;  %s22_s0 = smov 5  }
   0x2   :  { %5 = vst [vmem:[#allocation1] sm:$0x3] %v4_v0 }
   0x9   :  { %v10_v1 = vld [vmem:[#allocation1 + $0x1] sm:$0x1]   ;;  %v6_v2 = vld [vmem:[#allocation1] sm:$0x1]  }
   0xa   :  { %11 = vrot.lane.b32.xlu0 %v10_v1, %s22_s0  ;;  %8 = vst.msk [vmem:[#allocation0] sm:$0x1] %vm7_vm0, %v6_v2  }
  0x7c   :  { %v12_v3 = vpop.permute.xlu0 %11  }
  0x7d   :  { %14 = vst.msk [vmem:[#allocation0] sm:$0x1] %vm13_vm1, %v12_v3  }
  0x84   :  { %v18_v4 = vld [vmem:[#allocation0] sm:$0x1] }
  0x85   :  { %20 = vst [vmem:[%s40_s1] sm:$0x1] %v18_v4 }

// kernel: clip_get_image_features.1
= control target key start
LH: loop header
LB: loop body
LE: loop exit
PB: predicated region body
PF: predicated region fallthrough
CT: control target
= control target key end

     0   :  { %s2853_s0 = inlined_call_operand.vmem [shape: f32[1,10,192], index: 0, kind: input, shape index: {}]   ;;  %s2854_s1 = inlined_call_operand.vmem [shape: bf16[192,32], index: 1, kind: input, shape index: {}]   ;;  %s2855_s2 = inlined_call_operand.vmem [shape: f32[10,32], index: 2, kind: input, shape index: {}]   ;;  %s2856_s3 = inlined_call_operand.vmem [shape: f32[1,32], index: 3, kind: input, shape index: {}]   ;;  %s2857_s4 = inlined_call_operand.vmem [shape: f32[1,32], index: 4, kind: input, shape index: {}]   ;;  %s2858_s5 = inlined_call_operand.vmem [shape: f32[10,10], index: 5, kind: input, shape index: {}]   ;;  %s2859_s6 = inlined_call_operand.vmem [shape: f32[2,1,32], index: 6, kind: input, shape index: {}]   ;;  %s2860_s7 = inlined_call_operand.vmem [shape: f32[2,1,32], index: 7, kind: input, shape index: {}]   ;;  %s2861_s8 = inlined_call_operand.vmem [shape: bf16[2,32,96], index: 8, kind: input, shape index: {}]   ;;  %s2862_s9 = inlined_call_operand.vmem [shape: f32[2,1,96], index: 9, kind: input, shape index: {}]   ;;  %s2863_s10 = inlined_call_operand.vmem [shape: bf16[2,32,32], index: 10, kind: input, shape index: {}]   ;;  %s2864_s11 = inlined_call_operand.vmem [shape: f32[2,1,32], index: 11, kind: input, shape index: {}]   ;;  %s2865_s12 = inlined_call_operand.vmem [shape: f32[2,1,32], index: 12, kind: input, shape index: {}]   ;;  %s2866_s13 = inlined_call_operand.vmem [shape: f32[2,1,32], index: 13, kind: input, shape index: {}]   ;;  %s2867_s14 = inlined_call_operand.vmem [shape: bf16[2,32,128], index: 14, kind: input, shape index: {}]   ;;  %s2868_s15 = inlined_call_operand.vmem [shape: f32[2,1,128], index: 15, kind: input, shape index: {}]   ;;  %s2869_s16 = inlined_call_operand.vmem [shape: bf16[2,128,32], index: 16, kind: input, shape index: {}]   ;;  %s2870_s17 = inlined_call_operand.vmem [shape: f32[2,1,32], index: 17, kind: input, shape index: {}]   ;;  %s2871_s18 = inlined_call_operand.vmem [shape: f32[1,32], index: 18, kind: input, shape index: {}]   ;;  %s2872_s19 = inlined_call_operand.vmem [shape: f32[1,32], index: 19, kind: input, shape index: {}]   ;;  %s2873_s20 = inlined_call_operand.vmem [shape: bf16[32,16], index: 20, kind: input, shape index: {}]   ;;  %s2874_s21 = inlined_call_operand.hbm [shape: f32[1,2,16], index: 21, kind: output, shape index: {}]  }
   0x1   :  { %2883 = sst [smem:[#allocation9_spill]] %s2853_s0 }
   0x2   :  { %2884 = sst [smem:[#allocation10_spill]] %s2854_s1 }
   0x3   :  { %2885 = sst [smem:[#allocation11_spill]] %s2855_s2 }
   0x4   :  { %2886 = sst [smem:[#allocation12_spill]] %s2856_s3 }
   0x5   :  { %2887 = sst [smem:[#allocation13_spill]] %s2857_s4 }
   0x6   :  { %2888 = sst [smem:[#allocation14_spill]] %s2858_s5 }
   0x7   :  { %2889 = sst [smem:[#allocation15_spill]] %s2861_s8 }
   0x8   :  { %2890 = sst [smem:[#allocation16_spill]] %s2863_s10 }
   0x9   :  { %2891 = sst [smem:[#allocation17_spill]] %s2871_s18 }
   0xa   :  { %2892 = sst [smem:[#allocation18_spill]] %s2872_s19 }
   0xb   :  { %2893 = sst [smem:[#allocation19_spill]] %s2873_s20 }
   0xc   :  { %2894 = sst [smem:[#allocation20_spill]] %s2874_s21 }
   0xd   :  { %26 = vsyncpa [#allocation4], 0  ;;  %s2503_s2 = smov 0   ;;  %s2505_s25 = smov 0  }
   0xe   :  { %s2507_s26 = smov 0  }
   0xf LB: > { %2895 = sst [smem:[#allocation6_spill]] %s2375_s25  ;;  %s41_s3 = sadd.s32 1, %s2375_s25  ;;  %s2379_s26 = sphi %s2507_s26, %s32_s26   ;;  %s2375_s25 = sphi %s2505_s25, %s2921_s25   ;;  %s2371_s2 = sphi %s2503_s2, %s2920_s2  }
  0x10   : > { %2896 = sst [smem:[#allocation7_spill]] %s2379_s26  ;;  %p42_p0 = scmp.ge.s32.totalorder %s41_s3, 2 }
  0x11   : > { %p2039_p1 = scmp.ge.s32.totalorder %s2379_s26, 1  ;;  %p704_p2 = scmp.lt.s32.totalorder %s2379_s26, 3 }
  0x12   : > { %s2923_s3 = smov (%p42_p0, %s41_s3), 0 }
  0x13   : > { %2897 = sst [smem:[#allocation8_spill]] %s2923_s3  ;;  %p705_p3 = pnand %p2039_p1, %p704_p2 }
  0x14   : > { %p808_p4 = scmp.lt.s32.totalorder (!%p705_p3), %s2371_s2, 1  ;;  %s2898_s8 = sld [smem:[#allocation15_spill]] (!%p705_p3) }
  0x15   : > { %708 = sbr.rel (%p705_p3) target bundleno = 3719 (0xe87), region = 104  ;;  %s2899_s10 = sld [smem:[#allocation16_spill]] (!%p705_p3) }
  0x16   : > { %p2048_p5 = scmp.ne.s32.totalorder (!%p705_p3), %s2371_s2, 0 }
  0x1c   : > { %s2526_s28 = scalar_select %p808_p4, %s2371_s2, 1 }
  0x1d   : > { %856 = sbr.rel (%p2048_p5) target bundleno = 615 (0x267), region = 108  ;;  %s2900_s29 = sld [smem:[#allocation10_spill]] (!%p2048_p5)  ;;  %v2381_v1 = vmov (!%p2048_p5), 0   ;;  %vm961_vm0 = vcmask (!%p2048_p5), 523264   ;;  %vm1008_vm1 = vcmask (!%p2048_p5), 261120   ;;  %vm1012_vm2 = vcmask (!%p2048_p5), 254976  }
  0x1e   : > { %s2105_s23 = sshll.u32 %s2526_s28, 4  ;;  %s832_s18 = scalar_lea.vmem %s2865_s12, %s2526_s28  ;;  %965 = vmatprep.subr.bf16.mxu0 (!%p2048_p5), %v2381_v1 }
  0x1f   : > { %s2544_s3 = scalar_lea.vmem %s2898_s8, %s2105_s23  ;;  %s2549_s26 = scalar_lea.vmem %s2899_s10, %s2105_s23 }
  0x20   : > { %s835_s27 = scalar_lea.vmem %s2866_s13, %s2526_s28  ;;  %s2566_s8 = scalar_lea.vmem %s2867_s14, %s2105_s23 }
  0x21   : > { %s843_s10 = scalar_lea.vmem %s2868_s15, %s2526_s28  ;;  %s2108_s20 = sshll.u32 %s2526_s28, 6 }
  0x22   : > { %s2576_s30 = scalar_lea.vmem %s2869_s16, %s2108_s20  ;;  %s2901_s24 = sld [smem:[#allocation9_spill]] (!%p2048_p5) }
  0x23   : > { %v2256_v0 = vld [vmem:[%s2900_s29] sm:$0xff] (!%p2048_p5)   ;;  %v2257_v2 = vld [vmem:[%s2900_s29 + $0x8] sm:$0xff] (!%p2048_p5)   ;;  %v2258_v3 = vld [vmem:[%s2900_s29 + $0x10] sm:$0xff] (!%p2048_p5)   ;;  %s2902_s19 = sld [smem:[#allocation11_spill]] (!%p2048_p5)  ;;  %s2903_s23 = sld [smem:[#allocation12_spill]] (!%p2048_p5) }
  0x24   : > { %966 = vmatpush1.bf16.msra.mxu0 %v2256_v0  ;;  %v2259_v4 = vld [vmem:[%s2900_s29 + $0x18] sm:$0xff]   ;;  %v2260_v8 = vld [vmem:[%s2900_s29 + $0x20] sm:$0xff]   ;;  %v2261_v9 = vld [vmem:[%s2900_s29 + $0x28] sm:$0xff]   ;;  %s2904_s20 = sld [smem:[#allocation13_spill]] }
  0x25   : > { %967 = vmatprep.subr.bf16.mxu0 %v2381_v1  ;;  %v2262_v10 = vld [vmem:[%s2900_s29 + $0x30] sm:$0xff]   ;;  %v2263_v11 = vld [vmem:[%s2900_s29 + $0x38] sm:$0xff]   ;;  %v2264_v12 = vld [vmem:[%s2900_s29 + $0x40] sm:$0xff]  }
  0x26   : > { %v2265_v13 = vld [vmem:[%s2900_s29 + $0x48] sm:$0xff]   ;;  %v2266_v14 = vld [vmem:[%s2900_s29 + $0x50] sm:$0xff]   ;;  %v2267_v15 = vld [vmem:[%s2900_s29 + $0x58] sm:$0xff]  }
  0x28   : > { %968 = vmatpush1.bf16.msra.mxu0 %v2257_v2  ;;  %v858_v5 = vld [vmem:[%s2901_s24 + $0x8] sm:$0xff]  ;;  %v860_v6 = vld [vmem:[%s2901_s24 + $0x18] sm:$0x3]  ;;  %v857_v16 = vld [vmem:[%s2901_s24] sm:$0xff] }
  0x29   : > { %969 = vmatprep.subr.bf16.mxu0 %v2381_v1  ;;  %v886_v7 = vpack.c.bf16 %v860_v6, %v858_v5  ;;  %v859_v17 = vld [vmem:[%s2901_s24 + $0x10] sm:$0x3]  ;;  %v887_v19 = vld [vmem:[%s2902_s19] sm:$0xff]  ;;  %v888_v21 = vld [vmem:[%s2902_s19 + $0x8] sm:$0x3] }
  0x2a   : > { %v885_v18 = vpack.c.bf16 %v859_v17, %v857_v16  ;;  %v2062_v46 = vld [vmem:[%s2903_s23] ss:$0 sm:$0xff] }
  0x2b   : > { %2061 = vmatprep.mubr.msk.bf16.mxu0 %vm961_vm0, %v886_v7  ;;  %v2063_v48 = vld [vmem:[%s2904_s20] ss:$0 sm:$0xff] }
  0x2c   : > { %970 = vmatpush1.bf16.msra.mxu0 %v2258_v3 }
  0x2d   : > { %971 = vmatprep.subr.bf16.mxu0 %v2381_v1 }
  0x30   : > { %972 = vmatpush1.bf16.msra.mxu0 %v2259_v4 }
  0x31   : > { %973 = vmatprep.subr.bf16.mxu0 %v2381_v1 }
  0x34   : > { %974 = vmatpush1.bf16.msra.mxu0 %v2260_v8 }
  0x35   : > { %975 = vmatprep.subr.bf16.mxu0 %v2381_v1 }
  0x38   : > { %976 = vmatpush1.bf16.msra.mxu0 %v2261_v9 }
  0x39   : > { %977 = vmatprep.subr.bf16.mxu0 %v2381_v1 }
  0x3c   : > { %978 = vmatpush1.bf16.msra.mxu0 %v2262_v10 }
  0x3d   : > { %979 = vmatprep.subr.bf16.mxu0 %v2381_v1 }
  0x40   : > { %980 = vmatpush1.bf16.msra.mxu0 %v2263_v11 }
  0x41   : > { %981 = vmatprep.subr.bf16.mxu0 %v2381_v1 }
  0x44   : > { %982 = vmatpush1.bf16.msra.mxu0 %v2264_v12 }
  0x45   : > { %983 = vmatprep.subr.bf16.mxu0 %v2381_v1 }
  0x48   : > { %984 = vmatpush1.bf16.msra.mxu0 %v2265_v13 }
  0x49   : > { %985 = vmatprep.subr.bf16.mxu0 %v2381_v1 }
  0x4c   : > { %986 = vmatpush1.bf16.msra.mxu0 %v2266_v14 }
  0x4d   : > { %987 = vmatprep.subr.bf16.mxu0 %v2381_v1 }
  0x50   : > { %988 = vmatpush1.bf16.msra.mxu0 %v2267_v15 }
  0x53   : > { %998 = vmatmul.mubr.bf16.vlgmr.msra.gmra.mrb[0].mxu0 %v885_v18 }
 0x126   : > { %v999_v20 = vpop.f32.mrb[0].mxu0 }
 0x127   : > { %v1000_v22 = vadd.f32 %v999_v20, %v887_v19  ;;  %v1001_v23 = vpop.f32.mrb[1].mxu0 }
 0x128   : > { %v1002_v24 = vpop.f32.mrb[2].mxu0 }
 0x129   : > { %v1003_v25 = vadd.f32 %v1002_v24, %v888_v21  ;;  %v1004_v26 = vpop.f32.mrb[3].mxu0  ;;  %v1009_v27 = vsel %vm1008_vm1, %v1000_v22, 0.0 }
 0x12a   : > { %1010 = vadd.xlane.f32.xlu0 %v1009_v27 }
 0x12b   : > { %v1013_v28 = vsel %vm1012_vm2, %v1003_v25, 0.0 }
 0x12e   : > { %1014 = vadd.xlane.f32.xlu0 %v1013_v28 }
 0x1b7   : > { %v1011_v29 = vpop.xlane.xlu0 %1010 }
 0x1b8   : > { %v1017_v30 = vmul.f32 0.03125, %v1011_v29 }
 0x1ba   : > { %v1019_v31 = vsub.f32 %v1000_v22, %v1017_v30 }
 0x1bb   : > { %v1015_v32 = vpop.xlane.xlu0 %1014 }
 0x1bc   : > { %v1018_v33 = vmul.f32 0.03125, %v1015_v32  ;;  %v1021_v34 = vmul.f32 %v1019_v31, %v1019_v31 }
 0x1be   : > { %v1020_v35 = vsub.f32 %v1003_v25, %v1018_v33  ;;  %v1023_v36 = vsel %vm1008_vm1, %v1021_v34, 0.0 }
 0x1bf   : > { %1024 = vadd.xlane.f32.xlu1 %v1023_v36 }
 0x1c0   : > { %v1022_v37 = vmul.f32 %v1020_v35, %v1020_v35 }
 0x1c2   : > { %v1026_v38 = vsel %vm1012_vm2, %v1022_v37, 0.0 }
 0x1c3   : > { %1027 = vadd.xlane.f32.xlu1 %v1026_v38 }
 0x24c   : > { %v1025_v39 = vpop.xlane.xlu1 %1024 }
 0x24d   : > { %v1029_v40 = vmul.f32 0.03125, %v1025_v39 }
 0x24f   : > { %v1031_v41 = vadd.f32 1e-05, %v1029_v40 }
 0x250   : > { %v1028_v42 = vpop.xlane.xlu1 %1027 }
 0x251   : > { %2268 = vrsqrt.f32 %v1031_v41  ;;  %v1030_v43 = vmul.f32 0.03125, %v1028_v42 }
 0x253   : > { %v1032_v44 = vadd.f32 1e-05, %v1030_v43 }
 0x255   : > { %2270 = vrsqrt.f32 %v1032_v44 }
 0x25b   : > { %v2269_v45 = vpop.eup %2268 }
 0x25c   : > { %v1035_v47 = vmul.f32 %v2269_v45, %v1019_v31 }
 0x25e   : > { %v1043_v49 = vmul.f32 %v2062_v46, %v1035_v47 }
 0x25f   : > { %v2271_v50 = vpop.eup %2270 }
 0x260   : > { %v1051_v51 = vadd.f32 %v2063_v48, %v1043_v49  ;;  %v1036_v52 = vmul.f32 %v2271_v50, %v1020_v35 }
 0x262   : > { %1053 = vst.msk [vmem:[#allocation2] sm:$0xff] %vm1008_vm1, %v1051_v51  ;;  %v1044_v53 = vmul.f32 %v2062_v46, %v1036_v52 }
 0x264   : > { %v1052_v54 = vadd.f32 %v2063_v48, %v1044_v53 }
 0x266   : > { %1054 = vst.msk [vmem:[#allocation2 + $0x8] sm:$0x3] %vm1012_vm2, %v1052_v54 }
 0x267 PF: > { %vm1059_vm3 = vcmask 261120   ;;  %vm1063_vm4 = vcmask 254976   ;;  %v2277_v5 = vld [vmem:[%s2544_s3] sm:$0xff]   ;;  %v2382_v6 = vmov 0.0   ;;  %v2278_v7 = vld [vmem:[%s2544_s3 + $0x8] sm:$0xff]   ;;  %vm2383_vm5 = vmmov 0   ;;  %s2905_s4 = scalar_lea.vmem %s2859_s6, %s2526_s28  ;;  %s2906_s5 = scalar_lea.vmem %s2860_s7, %s2526_s28 }
 0x268   : > { %2138 = vmatprep.subr.bf16.mxu0 %v2382_v6  ;;  %2158 = vmatprep.subr.bf16.mxu1 %v2382_v6  ;;  %v2064_v16 = vld [vmem:[%s2905_s4] ss:$0 sm:$0xff]  ;;  %s2907_s21 = scalar_lea.vmem %s2862_s9, %s2526_s28  ;;  %s2384_s20 = smov 80   ;;  %vm1178_vm6 = vcmask 130048   ;;  %vm1226_vm7 = vcmask 80896   ;;  %vm1230_vm8 = vcmask 74752  }
 0x269   : > { %v2649_v55 = vld [vmem:[#allocation2] sm:$0xff]  ;;  %2139 = vmatpush3.bf16.msra.mxu0 %v2277_v5  ;;  %2142 = vmatprep.mubr.msk.bf16.mxu0 %vm2383_vm5, %v2382_v6  ;;  %s2385_s3 = smov 96   ;;  %s2386_s25 = smov 112   ;;  %vm1256_vm9 = vcmask 1044480  }
 0x26a   : > { %v1060_v57 = vsel %vm1059_vm3, %v2649_v55, 0.0  ;;  %2140 = vmatprep.subr.bf16.mxu0 %v2382_v6  ;;  %2160 = vmatprep.mubr.msk.bf16.mxu1 %vm2383_vm5, %v2382_v6  ;;  %v2065_v20 = vld [vmem:[%s2906_s5] ss:$0 sm:$0xff]  ;;  %s2908_s1 = sld [smem:[#allocation14_spill]]  ;;  %s2387_s0 = smov 64  }
 0x26b   : > { %1061 = vadd.xlane.f32.xlu0 %v1060_v57  ;;  %v2066_v25 = vld [vmem:[%s2907_s21] ss:$0 sm:$0xff]  ;;  %s2388_s21 = smov 48   ;;  %s2910_s23 = scalar_lea.vmem %s2870_s17, %s2526_s28 }
 0x26c   : > { %p2095_p6 = scmp.ne.s32.totalorder %s2371_s2, 1 }
 0x26d   : > { %v2651_v56 = vld [vmem:[#allocation2 + $0x8] sm:$0x3]  ;;  %2141 = vmatpush3.bf16.msra.mxu0 %v2278_v7  ;;  %vm1760_vm10 = vcmask (!%p2095_p6), 1040384   ;;  %vm2391_vm11 = vmmov (!%p2095_p6), 0   ;;  %vm1851_vm12 = vcmask (!%p2095_p6), 123904  }
 0x26e   : > { %v1064_v58 = vsel %vm1063_vm4, %v2651_v56, 0.0  ;;  %2146 = vmatprep.subr.bf16.mxu0 %v2382_v6 }
 0x26f   : > { %1065 = vadd.xlane.f32.xlu0 %v1064_v58 }
 0x270   : > { %v1173_v38 = vld [vmem:[%s2908_s1] sm:$0xff]  ;;  %v1174_v41 = vld [vmem:[%s2908_s1 + $0x8] sm:$0x3] }
 0x2f8   : > { %v1062_v59 = vpop.xlane.xlu0 %1061 }
 0x2f9   : > { %v1068_v60 = vmul.f32 0.03125, %v1062_v59 }
 0x2fb   : > { %v1070_v61 = vsub.f32 %v2649_v55, %v1068_v60 }
 0x2fc   : > { %v1066_v62 = vpop.xlane.xlu0 %1065 }
 0x2fd   : > { %v1069_v63 = vmul.f32 0.03125, %v1066_v62  ;;  %v1072_v0 = vmul.f32 %v1070_v61, %v1070_v61 }
 0x2ff   : > { %v1071_v1 = vsub.f32 %v2651_v56, %v1069_v63  ;;  %v1074_v2 = vsel %vm1059_vm3, %v1072_v0, 0.0 }
 0x300   : > { %1075 = vadd.xlane.f32.xlu1 %v1074_v2 }
 0x301   : > { %v1073_v3 = vmul.f32 %v1071_v1, %v1071_v1 }
 0x303   : > { %v1077_v4 = vsel %vm1063_vm4, %v1073_v3, 0.0 }
 0x304   : > { %1078 = vadd.xlane.f32.xlu1 %v1077_v4 }
 0x38d   : > { %v1076_v8 = vpop.xlane.xlu1 %1075 }
 0x38e   : > { %v1080_v9 = vmul.f32 0.03125, %v1076_v8 }
 0x390   : > { %v1082_v10 = vadd.f32 1e-05, %v1080_v9 }
 0x391   : > { %v1079_v11 = vpop.xlane.xlu1 %1078 }
 0x392   : > { %2291 = vrsqrt.f32 %v1082_v10  ;;  %v1081_v12 = vmul.f32 0.03125, %v1079_v11 }
 0x394   : > { %v1083_v13 = vadd.f32 1e-05, %v1081_v12 }
 0x396   : > { %2293 = vrsqrt.f32 %v1083_v13 }
 0x39c   : > { %v2292_v14 = vpop.eup %2291 }
 0x39d   : > { %v1086_v15 = vmul.f32 %v2292_v14, %v1070_v61 }
 0x39f   : > { %v1094_v19 = vmul.f32 %v2064_v16, %v1086_v15 }
 0x3a0   : > { %v2294_v17 = vpop.eup %2293 }
 0x3a1   : > { %v1087_v18 = vmul.f32 %v2294_v17, %v1071_v1  ;;  %v1102_v22 = vadd.f32 %v2065_v20, %v1094_v19 }
 0x3a3   : > { %v1095_v21 = vmul.f32 %v2064_v16, %v1087_v18 }
 0x3a5   : > { %v1103_v23 = vadd.f32 %v2065_v20, %v1095_v21 }
 0x3a7   : > { %v1108_v24 = vpack.c.bf16 %v1103_v23, %v1102_v22 }
 0x3a9   : > { %2143 = vmatmul.mubr.msk.bf16.vlgmr.msra.gmra.mrb[0].mxu0 %vm1059_vm3, %v1108_v24 }
 0x3aa   : > { %2148 = vmatprep.mubr.msk.bf16.mxu0 %vm2383_vm5, %v2382_v6 }
 0x47c   : > { %v1165_v26 = vpop.f32.mrb[0].mxu0 }
 0x47d   : > { %v2144_v27 = vpop.f32.mrb[1].mxu0  ;;  %v1166_v29 = vadd.f32 %v2066_v25, %v1165_v26 }
 0x47e   : > { %v1168_v28 = vpop.f32.mrb[2].mxu0 }
 0x47f   : > { %v1169_v30 = vadd.f32 %v2066_v25, %v1168_v28  ;;  %v2145_v31 = vpop.f32.mrb[3].mxu0 }
 0x481   : > { %v2689_v32 = vpack.c.bf16 %v1169_v30, %v1166_v29 }
 0x483   : > { %1303 = vrot.lane.b32.xlu1 %v2689_v32, %s2384_s20  ;;  %1176 = vrot.lane.b32.xlu0 %v2689_v32, %s2385_s3  ;;  %s2389_s20 = smov 16  }
 0x487   : > { %1301 = vrot.lane.b32.xlu1 %v2689_v32, %s2386_s25  ;;  %s2909_s25 = scalar_lea.vmem %s2864_s11, %s2526_s28 }
 0x4f5   : > { %v1304_v33 = vpop.permute.xlu1 %1303  ;;  %v1177_v34 = vpop.permute.xlu0 %1176 }
 0x4f6   : > { %v1183_v35 = vsel %vm1178_vm6, %v1177_v34, 0  ;;  %v1309_v36 = vsel %vm1178_vm6, %v1304_v33, 0  ;;  %v2279_v33 = vld [vmem:[%s2549_s26] sm:$0xff]  }
 0x4f7   : > { %2147 = vmatpush3.bf16.xpose.msra.mxu0 %v1183_v35  ;;  %2159 = vmatpush3.bf16.xpose.msra.mxu1 %v1309_v36  ;;  %v2280_v36 = vld [vmem:[%s2549_s26 + $0x8] sm:$0xff]  }
 0x4f8   : > { %2152 = vmatprep.subr.bf16.mxu0 %v2382_v6  ;;  %2170 = vmatprep.subr.bf16.mxu1 %v2382_v6 }
 0x4f9   : > { %v1302_v37 = vpop.permute.xlu1 %1301 }
 0x4fe   : > { %2149 = vmatmul.mubr.msk.bf16.vlgmr.msra.gmra.mrb[4].mxu0 %vm1178_vm6, %v2689_v32  ;;  %2161 = vmatmul.mubr.msk.bf16.vlgmr.msra.gmra.mrb[0].mxu1 %vm1178_vm6, %v1302_v37 }
 0x4ff   : > { %2154 = vmatprep.mubr.msk.bf16.mxu0 %vm2383_vm5, %v2382_v6  ;;  %2174 = vmatprep.mubr.msk.bf16.mxu1 %vm2383_vm5, %v2382_v6 }
 0x500   : > { %2171 = vmatpush3.bf16.msra.mxu1 %v2279_v33  ;;  %v2289_v33 = vld [vmem:[%s2576_s30 + $0x30] sm:$0xff]  }
 0x501   : > { %2172 = vmatprep.subr.bf16.mxu1 %v2382_v6 }
 0x504   : > { %2173 = vmatpush3.bf16.msra.mxu1 %v2280_v36 }
 0x505   : > { %2186 = vmatprep.subr.bf16.mxu1 %v2382_v6 }
 0x5d1   : > { %v1219_v39 = vpop.f32.mrb[4].mxu0  ;;  %v1345_v40 = vpop.f32.mrb[0].mxu1 }
 0x5d2   : > { %v1220_v42 = vadd.f32 %v1219_v39, %v1173_v38  ;;  %v2150_v43 = vpop.f32.mrb[5].mxu0  ;;  %v2162_v44 = vpop.f32.mrb[1].mxu1  ;;  %v1346_v51 = vadd.f32 %v1345_v40, %v1173_v38 }
 0x5d3   : > { %v1222_v45 = vpop.f32.mrb[6].mxu0  ;;  %v1348_v46 = vpop.f32.mrb[2].mxu1 }
 0x5d4   : > { %v1223_v47 = vadd.f32 %v1222_v45, %v1174_v41  ;;  %v2151_v48 = vpop.f32.mrb[7].mxu0  ;;  %v2163_v49 = vpop.f32.mrb[3].mxu1  ;;  %v1227_v50 = vsel %vm1226_vm7, %v1220_v42, -inf  ;;  %v1349_v53 = vadd.f32 %v1348_v46, %v1174_v41  ;;  %v1352_v54 = vsel %vm1226_vm7, %v1346_v51, -inf }
 0x5d5   : > { %1228 = vmax.xlane.f32.xlu1 %v1227_v50 }
 0x5d6   : > { %v1231_v52 = vsel %vm1230_vm8, %v1223_v47, -inf  ;;  %v1355_v57 = vsel %vm1230_vm8, %v1349_v53, -inf }
 0x5d7   : > { %1232 = vmax.xlane.f32.xlu0 %v1231_v52 }
 0x5db   : > { %1353 = vmax.xlane.f32.xlu0 %v1352_v54 }
 0x5df   : > { %1356 = vmax.xlane.f32.xlu0 %v1355_v57 }
 0x662   : > { %v1229_v58 = vpop.xlane.xlu1 %1228 }
 0x663   : > { %v1234_v59 = vsub.f32 %v1220_v42, %v1229_v58 }
 0x664   : > { %v1233_v60 = vpop.xlane.xlu0 %1232 }
 0x665   : > { %v1236_v61 = vmul.f32 1.442695, %v1234_v59  ;;  %v1235_v62 = vsub.f32 %v1223_v47, %v1233_v60 }
 0x667   : > { %2295 = vpow2.f32 %v1236_v61  ;;  %v1238_v63 = vmul.f32 1.442695, %v1235_v62 }
 0x668   : > { %v1354_v0 = vpop.xlane.xlu0 %1353 }
 0x669   : > { %2297 = vpow2.f32 %v1238_v63  ;;  %v1358_v1 = vsub.f32 %v1346_v51, %v1354_v0  ;;  %v2077_v51 = vld [vmem:[%s2909_s25] ss:$0 sm:$0xff]  ;;  %s2912_s25 = sld [smem:[#allocation17_spill]] (!%p2095_p6) }
 0x66b   : > { %v1360_v2 = vmul.f32 1.442695, %v1358_v1 }
 0x66c   : > { %v1357_v3 = vpop.xlane.xlu0 %1356 }
 0x66d   : > { %2299 = vpow2.f32 %v1360_v2  ;;  %v1359_v4 = vsub.f32 %v1349_v53, %v1357_v3 }
 0x66f   : > { %v1362_v5 = vmul.f32 1.442695, %v1359_v4 }
 0x671   : > { %v2296_v7 = vpop.eup %2295  ;;  %2301 = vpow2.f32 %v1362_v5 }
 0x672   : > { %v1240_v8 = vsel %vm1226_vm7, %v2296_v7, 0.0 }
 0x673   : > { %v2298_v9 = vpop.eup %2297  ;;  %1241 = vadd.xlane.f32.xlu1 %v1240_v8  ;;  %v2281_v8 = vld [vmem:[%s2566_s8] sm:$0xff]  }
 0x674   : > { %v1243_v10 = vsel %vm1230_vm8, %v2298_v9, 0.0 }
 0x675   : > { %1244 = vadd.xlane.f32.xlu0 %v1243_v10 }
 0x677   : > { %v2300_v11 = vpop.eup %2299 }
 0x678   : > { %v1364_v12 = vsel %vm1226_vm7, %v2300_v11, 0.0 }
 0x679   : > { %1365 = vadd.xlane.f32.xlu1 %v1364_v12 }
 0x67b   : > { %v2302_v13 = vpop.eup %2301 }
 0x67c   : > { %v1367_v14 = vsel %vm1230_vm8, %v2302_v13, 0.0 }
 0x67d   : > { %1368 = vadd.xlane.f32.xlu0 %v1367_v14 }
 0x68a   : > { %1251 = vrot.lane.b32.xlu1 %v2689_v32, %s2387_s0 }
 0x693   : > { %1375 = vrot.lane.b32.xlu0 %v2689_v32, %s2388_s21  ;;  %s2911_s21 = sld [smem:[#allocation19_spill]] (!%p2095_p6) }
 0x700   : > { %v1242_v15 = vpop.xlane.xlu1 %1241 }
 0x701   : > { %2303 = vrcp.f32 %v1242_v15 }
 0x702   : > { %v1245_v16 = vpop.xlane.xlu0 %1244 }
 0x703   : > { %2305 = vrcp.f32 %v1245_v16 }
 0x706   : > { %v1366_v17 = vpop.xlane.xlu1 %1365 }
 0x707   : > { %2307 = vrcp.f32 %v1366_v17  ;;  %v2078_v17 = vld [vmem:[%s832_s18] ss:$0 sm:$0xff] }
 0x70a   : > { %v1252_v18 = vpop.permute.xlu1 %1251  ;;  %v1369_v19 = vpop.xlane.xlu0 %1368 }
 0x70b   : > { %v2304_v20 = vpop.eup %2303  ;;  %v1258_v21 = vsel %vm1256_vm9, %v1252_v18, 0  ;;  %2309 = vrcp.f32 %v1369_v19 }
 0x70c   : > { %2153 = vmatpush3.bf16.msra.mxu0 %v1258_v21  ;;  %v1247_v23 = vmul.f32 %v2304_v20, %v2296_v7 }
 0x70d   : > { %v2306_v22 = vpop.eup %2305  ;;  %2164 = vmatprep.subr.bf16.mxu0 %v2382_v6 }
 0x70e   : > { %v1249_v24 = vmul.f32 %v2306_v22, %v2298_v9  ;;  %v1376_v25 = vpop.permute.xlu0 %1375  ;;  %v2282_v9 = vld [vmem:[%s2566_s8 + $0x8] sm:$0xff]   ;;  %v2079_v22 = vld [vmem:[%s835_s27] ss:$0 sm:$0xff]  ;;  %s2913_s8 = sld [smem:[#allocation18_spill]] (!%p2095_p6) }
 0x70f   : > { %v1381_v27 = vsel %vm1256_vm9, %v1376_v25, 0 }
 0x710   : > { %v1250_v26 = vpack.c.bf16 %v1249_v24, %v1247_v23 }
 0x711   : > { %v2308_v28 = vpop.eup %2307 }
 0x712   : > { %2155 = vmatmul.mubr.msk.bf16.vlgmr.msra.gmra.mrb[8].mxu0 %vm1226_vm7, %v1250_v26  ;;  %v1371_v30 = vmul.f32 %v2308_v28, %v2300_v11  ;;  %v2284_v28 = vld [vmem:[%s2576_s30 + $0x8] sm:$0xff]  }
 0x713   : > { %2165 = vmatpush3.bf16.msra.mxu0 %v1381_v27  ;;  %2166 = vmatprep.mubr.msk.bf16.mxu0 %vm2383_vm5, %v2382_v6  ;;  %v2283_v27 = vld [vmem:[%s2576_s30] sm:$0xff]  }
 0x714   : > { %2178 = vmatprep.subr.bf16.mxu0 %v2382_v6 }
 0x715   : > { %v2310_v29 = vpop.eup %2309 }
 0x716   : > { %v1373_v31 = vmul.f32 %v2310_v29, %v2302_v13  ;;  %v2285_v29 = vld [vmem:[%s2576_s30 + $0x10] sm:$0xff]  }
 0x718   : > { %v1374_v32 = vpack.c.bf16 %v1373_v31, %v1371_v30  ;;  %v2286_v30 = vld [vmem:[%s2576_s30 + $0x18] sm:$0xff]   ;;  %v2287_v31 = vld [vmem:[%s2576_s30 + $0x20] sm:$0xff]  }
 0x71a   : > { %2167 = vmatmul.mubr.msk.bf16.vlgmr.msra.gmra.mrb[12].mxu0 %vm1226_vm7, %v1374_v32  ;;  %v2288_v32 = vld [vmem:[%s2576_s30 + $0x28] sm:$0xff]  }
 0x71b   : > { %2182 = vmatprep.mubr.msk.bf16.mxu0 %vm2383_vm5, %v2382_v6  ;;  %2179 = vmatpush3.bf16.msra.mxu0 %v2281_v8  ;;  %v2323_v8 = vld [vmem:[%s2911_s21] sm:$0xff] (!%p2095_p6)  }
 0x71c   : > { %2180 = vmatprep.subr.bf16.mxu0 %v2382_v6 }
 0x71f   : > { %2181 = vmatpush3.bf16.msra.mxu0 %v2282_v9  ;;  %v2390_v9 = vmov (!%p2095_p6), 0.0  }
 0x720   : > { %2206 = vmatprep.subr.bf16.mxu0 (!%p2095_p6), %v2390_v9 }
 0x7e5   : > { %v1294_v34 = vpop.f32.mrb[8].mxu0 }
 0x7e6   : > { %v2156_v35 = vpop.f32.mrb[9].mxu0 }
 0x7e7   : > { %v1297_v37 = vpop.f32.mrb[10].mxu0  ;;  %v2080_v35 = vld [vmem:[%s843_s10] ss:$0 sm:$0xff] }
 0x7e8   : > { %v2157_v38 = vpop.f32.mrb[11].mxu0 }
 0x7ed   : > { %v1417_v39 = vpop.f32.mrb[12].mxu0 }
 0x7ee   : > { %v2168_v40 = vpop.f32.mrb[13].mxu0 }
 0x7ef   : > { %v1420_v41 = vpop.f32.mrb[14].mxu0 }
 0x7f0   : > { %v2272_v42 = vpack.i.bf16 %v1420_v41, %v1417_v39  ;;  %v2169_v43 = vpop.f32.mrb[15].mxu0 }
 0x7f2   : > { %2273 = vrot.lane.b32.xlu1 %v2272_v42, %s2389_s20 }
 0x864   : > { %v2274_v44 = vpop.permute.xlu1 %2273 }
 0x865   : > { %v2276_v45 = vunpack.i.h.bf16 %v2274_v44  ;;  %v2275_v46 = vunpack.i.l.bf16 %v2274_v44 }
 0x867   : > { %v1433_v47 = vsel %vm1178_vm6, %v1297_v37, %v2276_v45  ;;  %v1432_v48 = vsel %vm1178_vm6, %v1294_v34, %v2275_v46  ;;  %v2290_v34 = vld [vmem:[%s2576_s30 + $0x38] sm:$0xff]  }
 0x868   : > { %v1438_v49 = vpack.c.bf16 %v1433_v47, %v1432_v48 }
 0x86a   : > { %2175 = vmatmul.mubr.msk.bf16.vlgmr.msra.gmra.mrb[4].mxu1 %vm1059_vm3, %v1438_v49 }
 0x86b   : > { %2202 = vmatprep.mubr.msk.bf16.mxu1 %vm2383_vm5, %v2382_v6  ;;  %2187 = vmatpush3.bf16.msra.mxu1 %v2283_v27 }
 0x86c   : > { %2188 = vmatprep.subr.bf16.mxu1 %v2382_v6 }
 0x86f   : > { %2189 = vmatpush3.bf16.msra.mxu1 %v2284_v28 }
 0x870   : > { %2190 = vmatprep.subr.bf16.mxu1 %v2382_v6 }
 0x873   : > { %2191 = vmatpush3.bf16.msra.mxu1 %v2285_v29 }
 0x874   : > { %2192 = vmatprep.subr.bf16.mxu1 %v2382_v6 }
 0x877   : > { %2193 = vmatpush3.bf16.msra.mxu1 %v2286_v30 }
 0x878   : > { %2194 = vmatprep.subr.bf16.mxu1 %v2382_v6 }
 0x87b   : > { %2195 = vmatpush3.bf16.msra.mxu1 %v2287_v31 }
 0x87c   : > { %2196 = vmatprep.subr.bf16.mxu1 %v2382_v6 }
 0x87f   : > { %2197 = vmatpush3.bf16.msra.mxu1 %v2288_v32 }
 0x880   : > { %2198 = vmatprep.subr.bf16.mxu1 %v2382_v6 }
 0x883   : > { %2199 = vmatpush3.bf16.msra.mxu1 %v2289_v33 }
 0x884   : > { %2200 = vmatprep.subr.bf16.mxu1 %v2382_v6 }
 0x887   : > { %2201 = vmatpush3.bf16.msra.mxu1 %v2290_v34 }
 0x93d   : > { %v1488_v50 = vpop.f32.mrb[4].mxu1 }
 0x93e   : > { %v1495_v52 = vadd.f32 %v1488_v50, %v2649_v55  ;;  %v2176_v53 = vpop.f32.mrb[5].mxu1 }
 0x93f   : > { %v1491_v54 = vpop.f32.mrb[6].mxu1 }
 0x940   : > { %v2744_v57 = vadd.f32 %v2077_v51, %v1495_v52  ;;  %v1496_v58 = vadd.f32 %v1491_v54, %v2651_v56  ;;  %v2177_v59 = vpop.f32.mrb[7].mxu1 }
 0x942   : > { %v2747_v60 = vadd.f32 %v2077_v51, %v1496_v58  ;;  %v1508_v61 = vsel %vm1059_vm3, %v2744_v57, 0.0  ;;  %v2094_v58 = vld [vmem:[%s2910_s23] ss:$0 sm:$0xff] }
 0x943   : > { %1509 = vadd.xlane.f32.xlu1 %v1508_v61 }
 0x944   : > { %v1511_v62 = vsel %vm1063_vm4, %v2747_v60, 0.0 }
 0x945   : > { %1512 = vadd.xlane.f32.xlu0 %v1511_v62 }
 0x9d0   : > { %v1510_v55 = vpop.xlane.xlu1 %1509 }
 0x9d1   : > { %v1514_v63 = vmul.f32 0.03125, %v1510_v55 }
 0x9d2   : > { %v1513_v0 = vpop.xlane.xlu0 %1512 }
 0x9d3   : > { %v1516_v1 = vsub.f32 %v2744_v57, %v1514_v63  ;;  %v1515_v2 = vmul.f32 0.03125, %v1513_v0 }
 0x9d5   : > { %v1517_v56 = vsub.f32 %v2747_v60, %v1515_v2  ;;  %v1518_v3 = vmul.f32 %v1516_v1, %v1516_v1 }
 0x9d7   : > { %v1520_v4 = vsel %vm1059_vm3, %v1518_v3, 0.0  ;;  %v1519_v5 = vmul.f32 %v1517_v56, %v1517_v56 }
 0x9d8   : > { %1521 = vadd.xlane.f32.xlu0 %v1520_v4 }
 0x9d9   : > { %v1523_v7 = vsel %vm1063_vm4, %v1519_v5, 0.0 }
 0x9da   : > { %1524 = vadd.xlane.f32.xlu1 %v1523_v7 }
 0xa65   : > { %v1522_v10 = vpop.xlane.xlu0 %1521 }
 0xa66   : > { %v1526_v11 = vmul.f32 0.03125, %v1522_v10  ;;  %v2324_v10 = vld [vmem:[%s2911_s21 + $0x8] sm:$0xff] (!%p2095_p6)  }
 0xa67   : > { %v1525_v12 = vpop.xlane.xlu1 %1524 }
 0xa68   : > { %v1528_v13 = vadd.f32 1e-05, %v1526_v11  ;;  %v1527_v14 = vmul.f32 0.03125, %v1525_v12 }
 0xa6a   : > { %2311 = vrsqrt.f32 %v1528_v13  ;;  %v1529_v15 = vadd.f32 1e-05, %v1527_v14 }
 0xa6c   : > { %2313 = vrsqrt.f32 %v1529_v15  ;;  %v2096_v15 = vld [vmem:[%s2912_s25] ss:$0 sm:$0xff] (!%p2095_p6) }
 0xa74   : > { %v2312_v16 = vpop.eup %2311 }
 0xa75   : > { %v1532_v18 = vmul.f32 %v2312_v16, %v1516_v1 }
 0xa76   : > { %v2314_v19 = vpop.eup %2313 }
 0xa77   : > { %v1540_v20 = vmul.f32 %v2078_v17, %v1532_v18  ;;  %v1533_v21 = vmul.f32 %v2314_v19, %v1517_v56 }
 0xa79   : > { %v1541_v23 = vmul.f32 %v2078_v17, %v1533_v21  ;;  %v1548_v24 = vadd.f32 %v2079_v22, %v1540_v20  ;;  %v2097_v17 = vld [vmem:[%s2913_s8] ss:$0 sm:$0xff] (!%p2095_p6) }
 0xa7b   : > { %v1549_v25 = vadd.f32 %v2079_v22, %v1541_v23 }
 0xa7d   : > { %v1554_v26 = vpack.c.bf16 %v1549_v25, %v1548_v24 }
 0xa7f   : > { %2183 = vmatmul.mubr.msk.bf16.vlgmr.msra.gmra.mrb[16].mxu0 %vm1059_vm3, %v1554_v26 }
 0xa80   : > { %2210 = vmatprep.mubr.msk.bf16.mxu0 (!%p2095_p6), %vm2391_vm11, %v2390_v9  ;;  %2207 = vmatpush3.bf16.msra.mxu0 (!%p2095_p6), %v2323_v8 }
 0xa81   : > { %2208 = vmatprep.subr.bf16.mxu0 (!%p2095_p6), %v2390_v9 }
 0xa84   : > { %2209 = vmatpush3.bf16.msra.mxu0 (!%p2095_p6), %v2324_v10 }
 0xb52   : > { %v1611_v36 = vpop.f32.mrb[16].mxu0 }
 0xb53   : > { %v1612_v37 = vadd.f32 %v2080_v35, %v1611_v36  ;;  %v2184_v38 = vpop.f32.mrb[17].mxu0 }
 0xb54   : > { %v1614_v39 = vpop.f32.mrb[18].mxu0 }
 0xb55   : > { %v2084_v40 = vmul.f32 -1.702, %v1612_v37  ;;  %v1615_v41 = vadd.f32 %v2080_v35, %v1614_v39  ;;  %v2185_v42 = vpop.f32.mrb[19].mxu0 }
 0xb57   : > { %v1622_v43 = vmul.f32 1.442695, %v2084_v40  ;;  %v2085_v44 = vmul.f32 -1.702, %v1615_v41 }
 0xb59   : > { %2315 = vpow2.f32 %v1622_v43  ;;  %v1624_v45 = vmul.f32 1.442695, %v2085_v44 }
 0xb5b   : > { %2317 = vpow2.f32 %v1624_v45 }
 0xb63   : > { %v2316_v6 = vpop.eup %2315 }
 0xb64   : > { %v1626_v46 = vadd.f32 1.0, %v2316_v6 }
 0xb65   : > { %v2318_v47 = vpop.eup %2317 }
 0xb66   : > { %2319 = vrcp.f32 %v1626_v46  ;;  %v1627_v48 = vadd.f32 1.0, %v2318_v47 }
 0xb68   : > { %2321 = vrcp.f32 %v1627_v48 }
 0xb70   : > { %v2320_v49 = vpop.eup %2319 }
 0xb71   : > { %v1632_v51 = vmul.f32 %v2320_v49, %v1612_v37 }
 0xb72   : > { %v2322_v50 = vpop.eup %2321 }
 0xb73   : > { %v1633_v52 = vmul.f32 %v2322_v50, %v1615_v41 }
 0xb75   : > { %v1650_v53 = vpack.c.bf16 %v1633_v52, %v1632_v51 }
 0xb77   : > { %2203 = vmatmul.mubr.bf16.vlgmr.msra.gmra.mrb[8].mxu1 %v1650_v53 }
 0xc4a   : > { %v1733_v54 = vpop.f32.mrb[8].mxu1 }
 0xc4b   : > { %v1740_v59 = vadd.f32 %v1733_v54, %v2744_v57  ;;  %v2204_v61 = vpop.f32.mrb[9].mxu1  ;;  %1756 = sbr.rel (%p2095_p6) target bundleno = 3684 (0xe64), region = 112 }
 0xc4c   : > { %v1736_v62 = vpop.f32.mrb[10].mxu1 }
 0xc4d   : > { %v1749_v55 = vadd.f32 %v2094_v58, %v1740_v59  ;;  %v1741_v63 = vadd.f32 %v1736_v62, %v2747_v60  ;;  %v2205_v0 = vpop.f32.mrb[11].mxu1 }
 0xc4f   : > { %1751 = vst.msk [vmem:[#allocation2] sm:$0xff] %vm1059_vm3, %v1749_v55  ;;  %v1750_v1 = vadd.f32 %v2094_v58, %v1741_v63  ;;  %v1758_v2 = vrot.slane (!%p2095_p6), %v1749_v55, 4 }
 0xc51   : > { %1752 = vst.msk [vmem:[#allocation2 + $0x8] sm:$0x3] %vm1063_vm4, %v1750_v1  ;;  %v1761_v56 = vsel (!%p2095_p6), %vm1760_vm10, %v1749_v55, %v1758_v2 }
 0xc52   : > { %v1764_v3 = vsel %vm1063_vm4, %v1761_v56, 0.0 }
 0xc53   : > { %1765 = vadd.xlane.f32.xlu0 %v1764_v3 }
 0xce0   : > { %v1766_v57 = vpop.xlane.xlu0 %1765 }
 0xce1   : > { %v1767_v4 = vmul.f32 0.03125, %v1766_v57 }
 0xce3   : > { %v1768_v5 = vsub.f32 %v1761_v56, %v1767_v4 }
 0xce5   : > { %v1769_v7 = vmul.f32 %v1768_v5, %v1768_v5 }
 0xce7   : > { %v1770_v60 = vsel %vm1063_vm4, %v1769_v7, 0.0 }
 0xce8   : > { %1771 = vadd.xlane.f32.xlu0 %v1770_v60 }
 0xd75   : > { %v1772_v11 = vpop.xlane.xlu0 %1771 }
 0xd76   : > { %v1773_v12 = vmul.f32 0.03125, %v1772_v11 }
 0xd78   : > { %v1774_v13 = vadd.f32 1e-05, %v1773_v12 }
 0xd7a   : > { %2325 = vrsqrt.f32 %v1774_v13 }
 0xd84   : > { %v2326_v14 = vpop.eup %2325 }
 0xd85   : > { %v1776_v16 = vmul.f32 %v2326_v14, %v1768_v5 }
 0xd87   : > { %v1783_v18 = vmul.f32 %v2096_v15, %v1776_v16 }
 0xd89   : > { %v1790_v19 = vadd.f32 %v2097_v17, %v1783_v18 }
 0xd8b   : > { %v1795_v20 = vpack.c.bf16 %v1790_v19, %v1790_v19 }
 0xd8d   : > { %2211 = vmatmul.mubr.msk.bf16.vlgmr.msra.gmra.mrb[0].mxu0 %vm1059_vm3, %v1795_v20 }
 0xe60   : > { %v1845_v21 = vpop.f32.mrb[0].mxu0 }
 0xe61   : > { %1852 = vst.msk [vmem:[#allocation3] sm:$0x3] %vm1851_vm12, %v1845_v21  ;;  %v2212_v22 = vpop.f32.mrb[1].mxu0 }
 0xe62   : > { %v1848_v23 = vpop.f32.mrb[2].mxu0 }
 0xe63   : > { %v2213_v24 = vpop.f32.mrb[3].mxu0 }
 0xe64 PF: > { %s2914_s5 = sld [smem:[#allocation7_spill]]  ;;  %s2392_s10 = smov [#allocation3]  }
 0xe65   : > { %s1862_s30 = sshll.u32 %s2392_s10, 4  ;;  %s1863_s30 = int_to_ptr.vmem [resolvable:$true] %s1862_s30 }
 0xe66   : > { %s2327_s23 = scalar_lea.vmem %s1863_s30, 32  ;;  %p2334_p11 = scmp.lt.s32.totalorder %s1863_s30, %s1863_s30 }
 0xe67   : > { %p2328_p8 = scmp.ne.s32.totalorder %s1863_s30, %s2327_s23  ;;  %p2335_p12 = scmp.lt.s32.totalorder %s2327_s23, %s2327_s23 }
 0xe69   : > { %p2336_p13 = por %p2335_p12, %p2334_p11 }
 0xe6a   : > { %s2915_s18 = sadd.s32 4294967295, %s2914_s5  }
 0xe6b   : > { %p2818_p7 = scmp.eq.s32.totalorder %s2915_s18, 1 }
 0xe6d   : > { %p2329_p9 = pnand %p2328_p8, %p2818_p7 }
 0xe6f   : > { %p2330_p10 = pneg %p2329_p9 }
 0xe71   : > { %p2337_p0 = pnand %p2336_p13, %p2330_p10 }
 0xe73   : > { %2340 = shalt.err (!%p2337_p0)
}
 0xe74   : > { %s2917_s2 = sld [smem:[#allocation20_spill]] }
 0xe7a   : > { %s2918_s20 = smov %s2917_s2  ;;  %s2341_s26 = scalar_lea.hbm %s2917_s2, 32 }
 0xe7b   : > { %p2342_p1 = scmp.ne.s32.totalorder %s2918_s20, %s2341_s26  ;;  %p2347_p4 = scmp.lt.u32.totalorder %s2341_s26, %s2918_s20 }
 0xe7d   : > { %p2343_p2 = pnand %p2342_p1, %p2818_p7 }
 0xe7f   : > { %p2344_p3 = pneg %p2343_p2 }
 0xe81   : > { %p2349_p5 = pnand %p2347_p4, %p2344_p3 }
 0xe83   : > { %2352 = shalt.err (!%p2349_p5)
}
 0xe84   : > { %2215 = dma.vmem_to_hbm [thread:$0]  (%p2818_p7), %s1863_s30, 32, %s2918_s20, [#allocation4]  }
 0xe85   : > { %2366 = dma.done.wait (%p2818_p7), [#allocation4], 32  }
 0xe86   : > { %2368 = vsyncadd (%p2818_p7), [#allocation4], 4294967264 }
 0xe87 PF: > { %s2919_s18 = sld [smem:[#allocation7_spill]]  ;;  %s2920_s2 = sld [smem:[#allocation6_spill]] }
 0xe88   : > { %s2921_s25 = sld [smem:[#allocation8_spill]] }
 0xe8d   : > { %s32_s26 = sadd.s32 1, %s2919_s18  }
 0xe8e   : > { %p29_p6 = scmp.ge.s32.totalorder %s32_s26, 4  }
 0xe90   :  { %31 = sbr.rel (!%p29_p6) target bundleno = 15 (0xf), region = 176 }
 0xe97   :  { %1875 = vsyncpa [#allocation4], 1 }
 0xe98   :  { %1877 = vsyncpa [#allocation4 + $0x1], 1 }

</bundles_post_ra>
